<compile_context>
chip_gen: v6e
topology: v6e:2x2x1
jax: 0.10.0
libtpu: 0.0.40
codegen_flags: <defaults>
</compile_context>

<pallas_src>
import jax
import jax.numpy as jnp
from jax.experimental import pallas as pl
from jax.experimental.pallas import tpu as pltpu


def make_origin_kernel(kmax, tb, seq, emb, ncp):
    """Fused conv(relu,maxpool) + fc kernel for one batch tile."""
    rows = tb * seq

    def kernel(x_ref, iu_ref, wconv_ref, bm_ref, wfc_ref, bfc_ref, o_ref):
        x = x_ref[...]                                    # (rows, emb) f32 slab

        # tap 0 (no shift): one matmul produces all three branches' partials.
        acc = jnp.dot(x.astype(jnp.bfloat16), wconv_ref[0],
                      preferred_element_type=jnp.float32)          # (rows, ncp)

        # taps 1..kmax-1: shift the shared slab up by k rows (built & cast once
        # per tap, shared by all branches). Rows that bleed past the end of an
        # example land at time positions the additive -1e30 mask kills below,
        # and zero-weight taps of the shorter kernels contribute nothing.
        for k in range(1, kmax):                          # static unroll, <= 4
            xs = jnp.concatenate(
                [x[k:, :], jnp.zeros((k, emb), jnp.float32)], axis=0
            ).astype(jnp.bfloat16)
            acc = acc + jnp.dot(xs, wconv_ref[k],
                                preferred_element_type=jnp.float32)

        # Fused epilogue: bias + time-validity mask (one additive term),
        # ReLU, max-pool over time — one pass over the 384-wide block.
        act = jnp.maximum(acc.reshape(tb, seq, ncp) + bm_ref[...], 0.0)
        feat = jnp.max(act, axis=1)                       # (tb, ncp) == f0|f1|f2

        # fc(317, 8) as ONE 512-deep matmul over [text_feats | image | user]
        # (aligned lane concat: 384- and 128-wide pieces).
        fused = jnp.concatenate([feat, iu_ref[...]], axis=1).astype(jnp.bfloat16)
        out = jnp.dot(fused, wfc_ref[...],
                      preferred_element_type=jnp.float32) + bfc_ref[...]
        o_ref[...] = out.astype(o_ref.dtype)              # lane-dense (tb, 128)

    return kernel


def prepare_origin_params(conv_ws, conv_bs, wfc, bfc, kernel_sizes, seq_len,
                          d_img, d_usr):
    """One-time fusion/padding of parameters into kernel layouts (hoisted out
    of the per-step forward path).

    conv_ws[g]: (K_g, E, C); conv_bs[g]: (1, C) f32;
    wfc: (3*C + d_img + d_usr, n_cls); bfc: (1, n_cls) f32."""
    KS = tuple(int(k) for k in kernel_sizes)
    nb = len(KS)
    KMAX = max(KS)
    E = conv_ws[0].shape[1]
    C = conv_ws[0].shape[2]
    n_cls = wfc.shape[1]
    CP, NP = 128, 128
    NCP = nb * CP
    S = seq_len
    NEG = jnp.float32(-1e30)
    assert nb * C + d_img + d_usr == wfc.shape[0]
    assert S >= KMAX

    # Fused conv weight: (KMAX, E, nb*CP); taps beyond each branch's K are zero.
    wconv = jnp.zeros((KMAX, E, NCP), jnp.float32)
    for g, (K, w) in enumerate(zip(KS, conv_ws)):
        wconv = wconv.at[:K, :, g * CP:g * CP + C].set(w.astype(jnp.float32))
    wconv = wconv.astype(jnp.bfloat16)

    # Conv bias + per-branch time-validity mask folded into one additive term.
    bm = jnp.zeros((S, NCP), jnp.float32)
    for g, (K, b) in enumerate(zip(KS, conv_bs)):
        bias_row = jnp.broadcast_to(b.astype(jnp.float32).reshape(1, C), (S, C))
        bm = bm.at[:, g * CP:g * CP + C].set(bias_row)
        bm = bm.at[S - K + 1:, g * CP:(g + 1) * CP].set(NEG)  # invalid t
    bm = bm.reshape(1, S, NCP)

    # Fused fc weight (nb*CP + CP, NP): text groups, then [image|user].
    wf32 = wfc.astype(jnp.float32)
    wfull = jnp.zeros((NCP + CP, NP), jnp.float32)
    for g in range(nb):
        wfull = wfull.at[g * CP:g * CP + C, :n_cls].set(wf32[g * C:(g + 1) * C])
    off = nb * C
    wfull = wfull.at[NCP:NCP + d_img + d_usr, :n_cls].set(
        wf32[off:off + d_img + d_usr])
    wfull = wfull.astype(jnp.bfloat16)

    bfull = jnp.zeros((1, NP), jnp.float32).at[:, :n_cls].set(
        bfc.astype(jnp.float32).reshape(1, n_cls))

    meta = dict(KS=KS, KMAX=KMAX, E=E, C=C, n_cls=n_cls, S=S,
                CP=CP, NP=NP, NCP=NCP, d_img=d_img, d_usr=d_usr)
    return dict(wconv=wconv, bm=bm, wfc=wfull, bfc=bfull, meta=meta)


def origin_forward(text, image, user, params):
    """text: (B,S,E) f32; image: (B,d_img) f32; user: (B,d_usr) f32."""
    m = params["meta"]
    KMAX, E, S = m["KMAX"], m["E"], m["S"]
    CP, NP, NCP = m["CP"], m["NP"], m["NCP"]
    n_cls, d_img, d_usr = m["n_cls"], m["d_img"], m["d_usr"]
    B = text.shape[0]
    assert text.shape == (B, S, E)
    assert S % 8 == 0, "seq_len must be a multiple of 8 for the aligned flatten"

    # ---- batch tiling: big tiles, but >=2 parallel steps when batch allows
    #      (v7x has 2 TensorCores; irrelevant overhead on v5e/v6e). ----
    TB = min(B, 128)                 # (TB*S, 384) f32 activation block <= ~3 MiB
    if B >= 16 and TB == B:
        TB = (((B + 1) // 2) + 7) // 8 * 8   # sublane-aligned half-batch tile
    Bp = ((B + TB - 1) // TB) * TB

    # ---- input layout plumbing (lane-dense, zero-padded) ----
    iu = jnp.concatenate([image, user], axis=1)                   # (B, 17)
    iu = jnp.pad(iu, ((0, Bp - B), (0, CP - (d_img + d_usr))))    # (Bp, 128)
    if Bp != B:
        text = jnp.pad(text, ((0, Bp - B), (0, 0), (0, 0)))
    x2 = text.reshape(Bp * S, E)                                  # free reshape

    kernel = make_origin_kernel(KMAX, TB, S, E, NCP)
    const2 = lambda i: (0, 0)
    const3 = lambda i: (0, 0, 0)

    out_p = pl.pallas_call(
        kernel,
        out_shape=jax.ShapeDtypeStruct((Bp, NP), jnp.float32),
        grid=(Bp // TB,),
        in_specs=[
            pl.BlockSpec((TB * S, E), lambda i: (i, 0)),    # text slab
            pl.BlockSpec((TB, CP), lambda i: (i, 0)),       # packed image|user
            pl.BlockSpec(params["wconv"].shape, const3),    # fused conv weight
            pl.BlockSpec(params["bm"].shape, const3),       # bias + time mask
            pl.BlockSpec(params["wfc"].shape, const2),      # fused fc weight
            pl.BlockSpec(params["bfc"].shape, const2),      # fc bias
        ],
        out_specs=pl.BlockSpec((TB, NP), lambda i: (i, 0)),
        compiler_params=pltpu.CompilerParams(
            dimension_semantics=("parallel",)),
    )(x2, iu, params["wconv"], params["bm"], params["wfc"], params["bfc"])

    return out_p[:B, :n_cls]


def init_params(key, kernel_sizes, kernel_num, embed_dim, d_img, d_usr, n_cls):
    """Deterministic synthetic params. Matmul weights stored bf16 (MXU dtype)."""
    d_in = len(kernel_sizes) * kernel_num + d_img + d_usr
    keys = jax.random.split(key, 2 * len(kernel_sizes) + 2)
    conv_ws, conv_bs = [], []
    for i, K in enumerate(kernel_sizes):
        std = (2.0 / (K * embed_dim + kernel_num)) ** 0.5
        w = std * jax.random.normal(keys[2 * i], (K, embed_dim, kernel_num),
                                    jnp.float32)
        b = 0.01 * jax.random.normal(keys[2 * i + 1], (1, kernel_num), jnp.float32)
        conv_ws.append(w.astype(jnp.bfloat16))
        conv_bs.append(b)
    std = (2.0 / (d_in + n_cls)) ** 0.5
    wfc = (std * jax.random.normal(keys[-2], (d_in, n_cls), jnp.float32)
           ).astype(jnp.bfloat16)
    bfc = 0.01 * jax.random.normal(keys[-1], (1, n_cls), jnp.float32)
    return conv_ws, conv_bs, wfc, bfc


def reference_forward(text, image, user, conv_ws, conv_bs, wfc, bfc, kernel_sizes):
    """Pure-JAX f32 reference using the same (bf16-rounded) parameter values."""
    B, S, E = text.shape
    feats = []
    for ksz, w, b in zip(kernel_sizes, conv_ws, conv_bs):
        w = w.astype(jnp.float32)                        # (K, E, C)
        T = S - ksz + 1
        acc = jnp.zeros((B, T, w.shape[2]), jnp.float32)
        for k in range(ksz):
            acc = acc + jnp.einsum("bte,ec->btc", text[:, k:k + T, :], w[k])
        act = jnp.maximum(acc + b, 0.0)
        feats.append(jnp.max(act, axis=1))               # (B, C)
    fused = jnp.concatenate(feats + [image, user], axis=1)
    return fused @ wfc.astype(jnp.float32) + bfc


if __name__ == "__main__":
    kernel_sizes = (3, 4, 5)
    kernel_num = 100          # 3*100 + 10 + 7 = 317, matching nn.Linear(317, 8)
    embed_dim = 32
    seq_len = 16
    batch = 8
    d_img, d_usr, n_cls = 10, 7, 8

    key = jax.random.PRNGKey(0)
    kt, ki, ku, kp = jax.random.split(key, 4)
    text = jax.random.normal(kt, (batch, seq_len, embed_dim), jnp.float32)
    image = jax.random.normal(ki, (batch, d_img), jnp.float32)
    user = jax.random.normal(ku, (batch, d_usr), jnp.float32)
    conv_ws, conv_bs, wfc, bfc = init_params(
        kp, kernel_sizes, kernel_num, embed_dim, d_img, d_usr, n_cls)

    params = prepare_origin_params(conv_ws, conv_bs, wfc, bfc,
                                   kernel_sizes, seq_len, d_img, d_usr)

    out = origin_forward(text, image, user, params)
    out = jax.block_until_ready(out)

    ref = reference_forward(text, image, user, conv_ws, conv_bs, wfc, bfc,
                            kernel_sizes)
    assert out.shape == (batch, n_cls)
    max_err = jnp.max(jnp.abs(out - ref))
    assert jnp.allclose(out, ref, atol=5e-2, rtol=5e-2), (
        f"mismatch vs reference; max abs diff = {max_err}")

    print("KERNEL_OK")
</pallas_src>

<mosaic_0001>
module attributes {stable_mosaic.version = 11 : i64} {
  func.func @kernel(%arg0: i32, %arg1: memref<128x32xf32, #tpu.memory_space<vmem>>, %arg2: memref<8x128xf32, #tpu.memory_space<vmem>>, %arg3: memref<5x32x384xbf16, #tpu.memory_space<vmem>>, %arg4: memref<1x16x384xf32, #tpu.memory_space<vmem>>, %arg5: memref<512x128xbf16, #tpu.memory_space<vmem>>, %arg6: memref<1x128xf32, #tpu.memory_space<vmem>>, %arg7: memref<8x128xf32, #tpu.memory_space<vmem>>) attributes {dimension_semantics = [#tpu.dimension_semantics<parallel>], iteration_bounds = array<i64: 1>, scalar_prefetch = 0 : i64, scratch_operands = 0 : i64, tpu.core_type = #tpu.core_type<tc>, window_params = [{transform_indices = @transform_0, window_bounds = array<i64: 128, 32>}, {transform_indices = @transform_1, window_bounds = array<i64: 8, 128>}, {pipeline_mode = #tpu.pipeline_mode<synchronous>, transform_indices = @transform_2, window_bounds = array<i64: 5, 32, 384>}, {pipeline_mode = #tpu.pipeline_mode<synchronous>, transform_indices = @transform_3, window_bounds = array<i64: 1, 16, 384>}, {pipeline_mode = #tpu.pipeline_mode<synchronous>, transform_indices = @transform_4, window_bounds = array<i64: 512, 128>}, {pipeline_mode = #tpu.pipeline_mode<synchronous>, transform_indices = @transform_5, window_bounds = array<i64: 1, 128>}, {transform_indices = @transform_6, window_bounds = array<i64: 8, 128>}]} {
    %c0 = arith.constant 0 : index
    %c0_0 = arith.constant 0 : index
    %0 = vector.load %arg1[%c0, %c0_0] : memref<128x32xf32, #tpu.memory_space<vmem>>, vector<128x32xf32>
    %1 = arith.truncf %0 : vector<128x32xf32> to vector<128x32xbf16>
    %c0_1 = arith.constant 0 : index
    %c0_2 = arith.constant 0 : index
    %c0_3 = arith.constant 0 : index
    %2 = vector.load %arg3[%c0_1, %c0_2, %c0_3] : memref<5x32x384xbf16, #tpu.memory_space<vmem>>, vector<1x32x384xbf16>
    %3 = vector.shape_cast %2 : vector<1x32x384xbf16> to vector<32x384xbf16>
    %cst = arith.constant dense<0.000000e+00> : vector<128x384xf32>
    %4 = tpu.matmul %1, %3, %cst {dimension_numbers = #tpu.dot_dimension_numbers<[1], [0], [0], [1], [0, 0, 1, 1], [], []>} : vector<128x32xbf16>, vector<32x384xbf16>, vector<128x384xf32> -> vector<128x384xf32>
    %5 = vector.extract_strided_slice %0 {offsets = [1, 0], sizes = [127, 32], strides = [1, 1]} : vector<128x32xf32> to vector<127x32xf32>
    %cst_4 = arith.constant 0.000000e+00 : f32
    %6 = vector.broadcast %cst_4 : f32 to vector<1x32xf32>
    %7 = tpu.concatenate %5, %6 in 0 : vector<127x32xf32>, vector<1x32xf32> -> vector<128x32xf32>
    %8 = arith.truncf %7 : vector<128x32xf32> to vector<128x32xbf16>
    %c1 = arith.constant 1 : index
    %c0_5 = arith.constant 0 : index
    %c0_6 = arith.constant 0 : index
    %9 = vector.load %arg3[%c1, %c0_5, %c0_6] : memref<5x32x384xbf16, #tpu.memory_space<vmem>>, vector<1x32x384xbf16>
    %10 = vector.shape_cast %9 : vector<1x32x384xbf16> to vector<32x384xbf16>
    %cst_7 = arith.constant dense<0.000000e+00> : vector<128x384xf32>
    %11 = tpu.matmul %8, %10, %cst_7 {dimension_numbers = #tpu.dot_dimension_numbers<[1], [0], [0], [1], [0, 0, 1, 1], [], []>} : vector<128x32xbf16>, vector<32x384xbf16>, vector<128x384xf32> -> vector<128x384xf32>
    %12 = arith.addf %4, %11 : vector<128x384xf32>
    %13 = vector.extract_strided_slice %0 {offsets = [2, 0], sizes = [126, 32], strides = [1, 1]} : vector<128x32xf32> to vector<126x32xf32>
    %cst_8 = arith.constant 0.000000e+00 : f32
    %14 = vector.broadcast %cst_8 : f32 to vector<2x32xf32>
    %15 = tpu.concatenate %13, %14 in 0 : vector<126x32xf32>, vector<2x32xf32> -> vector<128x32xf32>
    %16 = arith.truncf %15 : vector<128x32xf32> to vector<128x32xbf16>
    %c2 = arith.constant 2 : index
    %c0_9 = arith.constant 0 : index
    %c0_10 = arith.constant 0 : index
    %17 = vector.load %arg3[%c2, %c0_9, %c0_10] : memref<5x32x384xbf16, #tpu.memory_space<vmem>>, vector<1x32x384xbf16>
    %18 = vector.shape_cast %17 : vector<1x32x384xbf16> to vector<32x384xbf16>
    %cst_11 = arith.constant dense<0.000000e+00> : vector<128x384xf32>
    %19 = tpu.matmul %16, %18, %cst_11 {dimension_numbers = #tpu.dot_dimension_numbers<[1], [0], [0], [1], [0, 0, 1, 1], [], []>} : vector<128x32xbf16>, vector<32x384xbf16>, vector<128x384xf32> -> vector<128x384xf32>
    %20 = arith.addf %12, %19 : vector<128x384xf32>
    %21 = vector.extract_strided_slice %0 {offsets = [3, 0], sizes = [125, 32], strides = [1, 1]} : vector<128x32xf32> to vector<125x32xf32>
    %cst_12 = arith.constant 0.000000e+00 : f32
    %22 = vector.broadcast %cst_12 : f32 to vector<3x32xf32>
    %23 = tpu.concatenate %21, %22 in 0 : vector<125x32xf32>, vector<3x32xf32> -> vector<128x32xf32>
    %24 = arith.truncf %23 : vector<128x32xf32> to vector<128x32xbf16>
    %c3 = arith.constant 3 : index
    %c0_13 = arith.constant 0 : index
    %c0_14 = arith.constant 0 : index
    %25 = vector.load %arg3[%c3, %c0_13, %c0_14] : memref<5x32x384xbf16, #tpu.memory_space<vmem>>, vector<1x32x384xbf16>
    %26 = vector.shape_cast %25 : vector<1x32x384xbf16> to vector<32x384xbf16>
    %cst_15 = arith.constant dense<0.000000e+00> : vector<128x384xf32>
    %27 = tpu.matmul %24, %26, %cst_15 {dimension_numbers = #tpu.dot_dimension_numbers<[1], [0], [0], [1], [0, 0, 1, 1], [], []>} : vector<128x32xbf16>, vector<32x384xbf16>, vector<128x384xf32> -> vector<128x384xf32>
    %28 = arith.addf %20, %27 : vector<128x384xf32>
    %29 = vector.extract_strided_slice %0 {offsets = [4, 0], sizes = [124, 32], strides = [1, 1]} : vector<128x32xf32> to vector<124x32xf32>
    %cst_16 = arith.constant 0.000000e+00 : f32
    %30 = vector.broadcast %cst_16 : f32 to vector<4x32xf32>
    %31 = tpu.concatenate %29, %30 in 0 : vector<124x32xf32>, vector<4x32xf32> -> vector<128x32xf32>
    %32 = arith.truncf %31 : vector<128x32xf32> to vector<128x32xbf16>
    %c4 = arith.constant 4 : index
    %c0_17 = arith.constant 0 : index
    %c0_18 = arith.constant 0 : index
    %33 = vector.load %arg3[%c4, %c0_17, %c0_18] : memref<5x32x384xbf16, #tpu.memory_space<vmem>>, vector<1x32x384xbf16>
    %34 = vector.shape_cast %33 : vector<1x32x384xbf16> to vector<32x384xbf16>
    %cst_19 = arith.constant dense<0.000000e+00> : vector<128x384xf32>
    %35 = tpu.matmul %32, %34, %cst_19 {dimension_numbers = #tpu.dot_dimension_numbers<[1], [0], [0], [1], [0, 0, 1, 1], [], []>} : vector<128x32xbf16>, vector<32x384xbf16>, vector<128x384xf32> -> vector<128x384xf32>
    %36 = arith.addf %28, %35 : vector<128x384xf32>
    %37 = vector.shape_cast %36 : vector<128x384xf32> to vector<8x16x384xf32>
    %c0_20 = arith.constant 0 : index
    %c0_21 = arith.constant 0 : index
    %c0_22 = arith.constant 0 : index
    %38 = vector.load %arg4[%c0_20, %c0_21, %c0_22] : memref<1x16x384xf32, #tpu.memory_space<vmem>>, vector<1x16x384xf32>
    %39 = vector.broadcast %38 : vector<1x16x384xf32> to vector<8x16x384xf32>
    %40 = arith.addf %37, %39 : vector<8x16x384xf32>
    %cst_23 = arith.constant 0.000000e+00 : f32
    %41 = vector.broadcast %cst_23 : f32 to vector<8x16x384xf32>
    %42 = arith.maximumf %40, %41 : vector<8x16x384xf32>
    %cst_24 = arith.constant dense<0xFF800000> : vector<8x384xf32>
    %43 = vector.multi_reduction <maximumf>, %42, %cst_24 [1] : vector<8x16x384xf32> to vector<8x384xf32>
    %c0_25 = arith.constant 0 : index
    %c0_26 = arith.constant 0 : index
    %44 = vector.load %arg2[%c0_25, %c0_26] : memref<8x128xf32, #tpu.memory_space<vmem>>, vector<8x128xf32>
    %45 = tpu.concatenate %43, %44 in 1 : vector<8x384xf32>, vector<8x128xf32> -> vector<8x512xf32>
    %46 = arith.truncf %45 : vector<8x512xf32> to vector<8x512xbf16>
    %c0_27 = arith.constant 0 : index
    %c0_28 = arith.constant 0 : index
    %47 = vector.load %arg5[%c0_27, %c0_28] : memref<512x128xbf16, #tpu.memory_space<vmem>>, vector<512x128xbf16>
    %cst_29 = arith.constant dense<0.000000e+00> : vector<8x128xf32>
    %48 = tpu.matmul %46, %47, %cst_29 {dimension_numbers = #tpu.dot_dimension_numbers<[1], [0], [0], [1], [0, 0, 1, 1], [], []>} : vector<8x512xbf16>, vector<512x128xbf16>, vector<8x128xf32> -> vector<8x128xf32>
    %c0_30 = arith.constant 0 : index
    %c0_31 = arith.constant 0 : index
    %49 = vector.load %arg6[%c0_30, %c0_31] : memref<1x128xf32, #tpu.memory_space<vmem>>, vector<1x128xf32>
    %50 = vector.broadcast %49 : vector<1x128xf32> to vector<8x128xf32>
    %51 = arith.addf %48, %50 : vector<8x128xf32>
    %c0_32 = arith.constant 0 : index
    %c0_33 = arith.constant 0 : index
    %52 = vector.load %arg7[%c0_32, %c0_33] : memref<8x128xf32, #tpu.memory_space<vmem>>, vector<8x128xf32>
    tpu.vector_store %arg7[%c0_32, %c0_33], %51 {strides = array<i32>} : memref<8x128xf32, #tpu.memory_space<vmem>>, vector<8x128xf32>,
    return
  }
  func.func @transform_0(%arg0: i32) -> (i32, i32) {
    %c0_i32 = arith.constant 0 : i32
    %c0_i32_0 = arith.constant 0 : i32
    return %arg0, %c0_i32 : i32, i32
  }
  func.func @transform_1(%arg0: i32) -> (i32, i32) {
    %c0_i32 = arith.constant 0 : i32
    %c0_i32_0 = arith.constant 0 : i32
    return %arg0, %c0_i32 : i32, i32
  }
  func.func @transform_2(%arg0: i32) -> (i32, i32, i32) {
    %c0_i32 = arith.constant 0 : i32
    %c0_i32_0 = arith.constant 0 : i32
    %c0_i32_1 = arith.constant 0 : i32
    %c0_i32_2 = arith.constant 0 : i32
    return %c0_i32, %c0_i32_0, %c0_i32_1 : i32, i32, i32
  }
  func.func @transform_3(%arg0: i32) -> (i32, i32, i32) {
    %c0_i32 = arith.constant 0 : i32
    %c0_i32_0 = arith.constant 0 : i32
    %c0_i32_1 = arith.constant 0 : i32
    %c0_i32_2 = arith.constant 0 : i32
    return %c0_i32, %c0_i32_0, %c0_i32_1 : i32, i32, i32
  }
  func.func @transform_4(%arg0: i32) -> (i32, i32) {
    %c0_i32 = arith.constant 0 : i32
    %c0_i32_0 = arith.constant 0 : i32
    %c0_i32_1 = arith.constant 0 : i32
    return %c0_i32, %c0_i32_0 : i32, i32
  }
  func.func @transform_5(%arg0: i32) -> (i32, i32) {
    %c0_i32 = arith.constant 0 : i32
    %c0_i32_0 = arith.constant 0 : i32
    %c0_i32_1 = arith.constant 0 : i32
    return %c0_i32, %c0_i32_0 : i32, i32
  }
  func.func @transform_6(%arg0: i32) -> (i32, i32) {
    %c0_i32 = arith.constant 0 : i32
    %c0_i32_0 = arith.constant 0 : i32
    return %arg0, %c0_i32 : i32, i32
  }
}

</mosaic_0001>

<bundles_post_ra>
// kernel: tpu_custom_call.1
= control target key start
LH: loop header
LB: loop body
LE: loop exit
PB: predicated region body
PF: predicated region fallthrough
CT: control target
= control target key end

     0   :  { %11 = vsyncpa [#allocation3], 0  ;;  %s4133_s0 = inlined_call_operand.vmem [shape: f32[128,32], index: 0, kind: input, shape index: {}]   ;;  %s4134_s1 = inlined_call_operand.vmem [shape: f32[8,128], index: 1, kind: input, shape index: {}]   ;;  %s4135_s2 = inlined_call_operand.hbm [shape: bf16[5,32,384], index: 2, kind: input, shape index: {}]   ;;  %s4136_s3 = inlined_call_operand.vmem [shape: f32[1,16,384], index: 3, kind: input, shape index: {}]   ;;  %s4137_s4 = inlined_call_operand.hbm [shape: bf16[512,128], index: 4, kind: input, shape index: {}]   ;;  %s4138_s5 = inlined_call_operand.vmem [shape: f32[1,128], index: 5, kind: input, shape index: {}]   ;;  %s4139_s6 = inlined_call_operand.hbm [shape: f32[8,128], index: 6, kind: output, shape index: {}]  }
   0x1   :  { %12 = vsyncpa [#allocation6], 0 }
   0x2   :  { %13 = vsyncpa [#allocation4], 0  ;;  %s3017_s21 = smov [#allocation2]  }
   0x3   :  { %s23_s22 = sshll.u32 %s3017_s21, 4  ;;  %s24_s22 = int_to_ptr.vmem [resolvable:$true] %s23_s22 }
   0x4   :  { %s2959_s23 = scalar_lea.vmem %s24_s22, 3840  ;;  %p2964_p1 = scmp.lt.s32.totalorder %s24_s22, %s24_s22 }
   0x5   :  { %p2960_p0 = scmp.ne.s32.totalorder %s24_s22, %s2959_s23  ;;  %p2965_p2 = scmp.lt.s32.totalorder %s2959_s23, %s2959_s23 }
   0x7   :  { %p2966_p3 = por %p2965_p2, %p2964_p1 }
   0x9   :  { %p2967_p4 = pnand %p2966_p3, %p2960_p0 }
   0xb   :  { %2970 = shalt.err (!%p2967_p4)
}
   0xc   :  { %s3018_s24 = smov 192   ;;  %s3019_s25 = smov 12  }
   0xd   :  { %29 = dma.hbm_to_vmem [thread:$0]  %s4135_s2, 3840, %s24_s22, [#allocation3], %s3018_s24, %s3018_s24, %s3019_s25  }
   0xe   :  { %s3020_s28 = smov [#allocation5]  }
   0xf   :  { %s37_s29 = sshll.u32 %s3020_s28, 4  ;;  %s38_s29 = int_to_ptr.vmem [resolvable:$true] %s37_s29 }
  0x10   :  { %s2979_s30 = scalar_lea.vmem %s38_s29, 4096  ;;  %p2984_p6 = scmp.lt.s32.totalorder %s38_s29, %s38_s29 }
  0x11   :  { %p2980_p5 = scmp.ne.s32.totalorder %s38_s29, %s2979_s30  ;;  %p2985_p7 = scmp.lt.s32.totalorder %s2979_s30, %s2979_s30 }
  0x13   :  { %p2986_p8 = por %p2985_p7, %p2984_p6 }
  0x15   :  { %p2987_p9 = pnand %p2986_p8, %p2980_p5 }
  0x17   :  { %2990 = shalt.err (!%p2987_p9)
}
  0x18   :  { %s3021_s7 = smov 64   ;;  %s3022_s8 = smov 4  }
  0x19   :  { %43 = dma.hbm_to_vmem [thread:$0]  %s4137_s4, 4096, %s38_s29, [#allocation6], %s3021_s7, %s3021_s7, %s3022_s8  }
  0x1a   :  { %3011 = dma.done.wait [#allocation3], 3840  }
  0x1b   :  { %3012 = vsyncadd [#allocation3], 4294963456 }
  0x1c   :  { %3013 = dma.done.wait [#allocation6], 4096  }
  0x1d   :  { %3014 = vsyncadd [#allocation6], 4294963200  ;;  %v3023_v0 = vmov 0   ;;  %v2879_v1 = vld [vmem:[#allocation2 + $0x4c] ss:$12 sps:$4 sm:$0xff]   ;;  %v3071_v5 = vld [vmem:[%s4133_s0] sm:$0xff] }
  0x1e   :  { %256 = vmatprep.mubr.bf16.mxu0 %v3023_v0  ;;  %316 = vmatprep.mubr.bf16.mxu1 %v3023_v0  ;;  %v2881_v2 = vld [vmem:[#allocation2 + $0x48] ss:$12 sps:$4 sm:$0xff]   ;;  %v2884_v4 = vld [vmem:[#allocation2 + $0x30] ss:$12 sps:$4 sm:$0xff]   ;;  %vm101_vm0 = vcmask 1046528   ;;  %v102_v8 = vrot.slane %v3071_v5, 1 }
  0x1f   :  { %236 = vmatprep.subr.bf16.mxu0 %v2879_v1  ;;  %2867 = vmatprep.subr.bf16.mxu1 %v2879_v1  ;;  %v2882_v3 = vld [vmem:[#allocation2 + $0x34] ss:$12 sps:$4 sm:$0xff]   ;;  %v3076_v6 = vld [vmem:[%s4133_s0 + $0x8] sm:$0xff]  ;;  %vm199_vm1 = vcmask 261120   ;;  %v3105_v15 = vld [vmem:[%s4133_s0 + $0x18] sm:$0xff]  ;;  %v701_v32 = vrot.slane %v3071_v5, 2 }
  0x20   :  { %237 = vmatpush1.bf16.msra.mxu0 %v2881_v2  ;;  %2869 = vmatpush1.bf16.msra.mxu1 %v2881_v2  ;;  %v3081_v7 = vld [vmem:[%s4133_s0 + $0x10] sm:$0xff]  ;;  %v3087_v9 = vld [vmem:[%s4133_s0 + $0x60] sm:$0xff]  ;;  %v103_v10 = vrot.slane %v3076_v6, 1  ;;  %v3094_v12 = vld [vmem:[%s4133_s0 + $0x68] sm:$0xff]  ;;  %v107_v26 = vrot.slane %v3105_v15, 1  ;;  %v702_v33 = vrot.slane %v3076_v6, 2 }
  0x21   :  { %238 = vmatprep.subr.bf16.mxu0 %v2882_v3  ;;  %2868 = vmatprep.subr.bf16.mxu1 %v2882_v3  ;;  %v105_v11 = vrot.slane %v3081_v7, 1  ;;  %v3099_v13 = vld [vmem:[%s4133_s0 + $0x70] sm:$0xff]  ;;  %v125_v14 = vrot.slane %v3087_v9, 1  ;;  %v127_v16 = vrot.slane %v3094_v12, 1  ;;  %v2885_v20 = vld [vmem:[#allocation2 + $0x20] ss:$12 sps:$4 sm:$0xff]  }
  0x22   :  { %v129_v17 = vrot.slane %v3099_v13, 1  ;;  %v104_v18 = vsel %vm101_vm0, %v102_v8, %v103_v10  ;;  %v2886_v24 = vld [vmem:[#allocation2 + $0x50] ss:$12 sps:$4 sm:$0xff]   ;;  %v3118_v25 = vld [vmem:[%s4133_s0 + $0x20] sm:$0xff]  ;;  %v704_v34 = vrot.slane %v3081_v7, 2  ;;  %vm700_vm2 = vcmask 1045504  }
  0x23   :  { %v106_v19 = vsel %vm101_vm0, %v103_v10, %v105_v11  ;;  %v128_v22 = vsel %vm101_vm0, %v125_v14, %v127_v16  ;;  %v3124_v27 = vld [vmem:[%s4133_s0 + $0x78] sm:$0xff]  ;;  %v109_v29 = vrot.slane %v3118_v25, 1  ;;  %v108_v35 = vsel %vm101_vm0, %v105_v11, %v107_v26  ;;  %v3143_v39 = vld [vmem:[%s4133_s0 + $0x28] sm:$0xff]  ;;  %v3148_v40 = vld [vmem:[%s4133_s0 + $0x30] sm:$0xff]  ;;  %s3024_s28 = smov [#allocation7]  }
  0x24   :  { %239 = vmatpush1.bf16.msra.mxu0 %v2884_v4  ;;  %2870 = vmatpush1.bf16.msra.mxu1 %v2884_v4  ;;  %v150_v21 = vpack.c.bf16 %v106_v19, %v104_v18  ;;  %v130_v23 = vsel %vm101_vm0, %v127_v16, %v129_v17  ;;  %v131_v30 = vrot.slane %v3124_v27, 1  ;;  %v2887_v31 = vld [vmem:[#allocation2 + $0x38] ss:$12 sps:$4 sm:$0xff]   ;;  %v2890_v41 = vld [vmem:[#allocation2 + $0x1c] ss:$12 sps:$4 sm:$0xff]   ;;  %v703_v43 = vsel %vm700_vm2, %v701_v32, %v702_v33  ;;  %v3193_v63 = vld [vmem:[%s4133_s0 + $0x50] sm:$0xff] }
  0x25   :  { %v3126_v28 = vpack.c.bf16 %v130_v23, %v128_v22  ;;  %2787 = vmatprep.subr.bf16.mxu0 %v2885_v20  ;;  %2767 = vmatprep.subr.bf16.mxu1 %v2886_v24  ;;  %v110_v36 = vsel %vm101_vm0, %v107_v26, %v109_v29  ;;  %v2891_v42 = vld [vmem:[#allocation2 + $0x8] ss:$12 sps:$4 sm:$0xff]   ;;  %v705_v44 = vsel %vm700_vm2, %v702_v33, %v704_v34  ;;  %v706_v45 = vrot.slane %v3105_v15, 2  ;;  %v3175_v58 = vld [vmem:[%s4133_s0 + $0x38] sm:$0xff]  ;;  %v3182_v60 = vld [vmem:[%s4133_s0 + $0x40] sm:$0xff]  ;;  %s2520_s29 = sshll.u32 %s3024_s28, 4  ;;  %s2521_s29 = int_to_ptr.vmem [resolvable:$true] %s2520_s29 }
  0x26   :  { %v132_v37 = vsel %vm101_vm0, %v129_v17, %v131_v30  ;;  %v149_v38 = vsel %vm101_vm0, %v131_v30, 0.0  ;;  %v151_v46 = vpack.c.bf16 %v110_v36, %v108_v35  ;;  %v111_v48 = vrot.slane %v3143_v39, 1  ;;  %v2897_v52 = vld [vmem:[#allocation2 + $0x7c] ss:$12 sps:$4 sm:$0xff]   ;;  %v2888_v4 = vld [vmem:[#allocation2 + $0x18] ss:$12 sps:$4 sm:$0xff]   ;;  %p2996_p11 = scmp.lt.s32.totalorder %s2521_s29, %s2521_s29 }
  0x27   :  { %2536 = vmatmul.mubr.msk.bf16.vlgmr.msra.gmra.mxu0 %vm199_vm1, %v150_v21  ;;  %2542 = vmatmul.mubr.msk.bf16.vlgmr.msra.gmra.mxu1 %vm199_vm1, %v3126_v28  ;;  %v3155_v47 = vpack.c.bf16 %v149_v38, %v132_v37  ;;  %v113_v49 = vrot.slane %v3148_v40, 1  ;;  %v3159_v50 = vpack.c.bf16 %v705_v44, %v703_v43  ;;  %v708_v51 = vrot.slane %v3118_v25, 2  ;;  %v3188_v62 = vld [vmem:[%s4133_s0 + $0x48] sm:$0xff]  ;;  %v2894_v17 = vld [vmem:[#allocation2 + $0x4] ss:$12 sps:$4 sm:$0xff]   ;;  %s2991_s30 = scalar_lea.vmem %s2521_s29, 128 }
  0x28   :  { %2788 = vmatpush3.bf16.msra.mxu0 %v2885_v20  ;;  %2768 = vmatpush3.bf16.msra.mxu1 %v2886_v24  ;;  %v707_v53 = vsel %vm700_vm2, %v704_v34, %v706_v45  ;;  %v710_v55 = vrot.slane %v3143_v39, 2  ;;  %v112_v56 = vsel %vm101_vm0, %v109_v29, %v111_v48  ;;  %v712_v1 = vrot.slane %v3148_v40, 2  ;;  %v3211_v20 = vld [vmem:[%s4133_s0 + $0x58] sm:$0xff]  ;;  %v2892_v22 = vld [vmem:[#allocation2] ss:$12 sps:$4 sm:$0xff]   ;;  %p2992_p10 = scmp.ne.s32.totalorder %s2521_s29, %s2991_s30  ;;  %p2997_p12 = scmp.lt.s32.totalorder %s2991_s30, %s2991_s30 }
  0x29   :  { %266 = vmatprep.mubr.bf16.mxu0 %v3023_v0  ;;  %326 = vmatprep.mubr.bf16.mxu1 %v3023_v0  ;;  %v709_v54 = vsel %vm700_vm2, %v706_v45, %v708_v51  ;;  %v114_v57 = vsel %vm101_vm0, %v111_v48, %v113_v49  ;;  %v115_v3 = vrot.slane %v3175_v58, 1  ;;  %v117_v8 = vrot.slane %v3182_v60, 1 }
  0x2a   :  { %2769 = vmatprep.subr.bf16.mxu1 %v2887_v31  ;;  %2789 = vmatprep.subr.bf16.mxu0 %v2891_v42  ;;  %v3177_v59 = vpack.c.bf16 %v709_v54, %v707_v53  ;;  %v711_v61 = vsel %vm700_vm2, %v708_v51, %v710_v55  ;;  %v152_v2 = vpack.c.bf16 %v114_v57, %v112_v56  ;;  %v119_v11 = vrot.slane %v3188_v62, 1  ;;  %p2998_p13 = por %p2997_p12, %p2996_p11 }
  0x2b   :  { %v713_v10 = vsel %vm700_vm2, %v710_v55, %v712_v1  ;;  %v121_v16 = vrot.slane %v3193_v63, 1  ;;  %v116_v19 = vsel %vm101_vm0, %v113_v49, %v115_v3  ;;  %vm1080_vm3 = vcmask 1044480  }
  0x2c   :  { %2770 = vmatpush3.bf16.msra.mxu1 %v2887_v31  ;;  %2790 = vmatpush3.bf16.msra.mxu0 %v2891_v42  ;;  %v3203_v18 = vpack.c.bf16 %v713_v10, %v711_v61  ;;  %v1081_v23 = vrot.slane %v3071_v5, 3  ;;  %v1082_v24 = vrot.slane %v3076_v6, 3  ;;  %v1084_v26 = vrot.slane %v3081_v7, 3  ;;  %v2898_v31 = vld [vmem:[#allocation2 + $0x80] ss:$12 sps:$4 sm:$0xff]   ;;  %p2999_p0 = pnand %p2998_p13, %p2992_p10 }
  0x2d   :  { %502 = vmatprep.subr.bf16.mxu1 %v2890_v41  ;;  %834 = vmatprep.subr.bf16.mxu0 %v2897_v52  ;;  %v120_v29 = vsel %vm101_vm0, %v117_v8, %v119_v11  ;;  %v122_v30 = vsel %vm101_vm0, %v119_v11, %v121_v16  ;;  %v1086_v35 = vrot.slane %v3105_v15, 3  ;;  %v1088_v37 = vrot.slane %v3118_v25, 3  ;;  %v2903_v10 = vld [vmem:[#allocation2 + $0x68] ss:$12 sps:$4 sm:$0xff]  }
  0x2e   :  { %v1083_v32 = vsel %vm1080_vm3, %v1081_v23, %v1082_v24  ;;  %v1085_v33 = vsel %vm1080_vm3, %v1082_v24, %v1084_v26  ;;  %v154_v38 = vpack.c.bf16 %v122_v30, %v120_v29  ;;  %v123_v41 = vrot.slane %v3211_v20, 1 }
  0x2f   :  { %2537 = vmatmul.mubr.msk.bf16.gmra.mxu0 %vm199_vm1, %v151_v46  ;;  %2543 = vmatmul.mubr.msk.bf16.gmra.mxu1 %vm199_vm1, %v3155_v47  ;;  %v3224_v36 = vpack.c.bf16 %v1085_v33, %v1083_v32  ;;  %v1090_v42 = vrot.slane %v3143_v39, 3  ;;  %v1092_v43 = vrot.slane %v3148_v40, 3  ;;  %v1087_v44 = vsel %vm1080_vm3, %v1084_v26, %v1086_v35  ;;  %v2904_v32 = vld [vmem:[#allocation2 + $0x98] ss:$12 sps:$4 sm:$0xff]   ;;  %v2913_v33 = vld [vmem:[#allocation2 + $0xdc] ss:$12 sps:$4 sm:$0xff]  }
  0x30   :  { %276 = vmatprep.mubr.bf16.mxu0 %v3023_v0  ;;  %2771 = vmatprep.mubr.msk.bf16.mxu1 %vm199_vm1, %v150_v21  ;;  %v118_v21 = vsel %vm101_vm0, %v115_v3, %v117_v8  ;;  %v1089_v45 = vsel %vm1080_vm3, %v1086_v35, %v1088_v37  ;;  %v124_v52 = vsel %vm101_vm0, %v121_v16, %v123_v41  ;;  %v1461_v56 = vrot.slane %v3071_v5, 4  ;;  %v2901_v8 = vld [vmem:[#allocation2 + $0x64] ss:$12 sps:$4 sm:$0xff]  }
  0x31   :  { %v153_v34 = vpack.c.bf16 %v118_v21, %v116_v19  ;;  %v1091_v48 = vsel %vm1080_vm3, %v1088_v37, %v1090_v42  ;;  %v1093_v49 = vsel %vm1080_vm3, %v1090_v42, %v1092_v43  ;;  %v126_v53 = vsel %vm101_vm0, %v123_v41, %v125_v14  ;;  %v2895_v14 = vld [vmem:[#allocation2 + $0x78] ss:$12 sps:$4 sm:$0xff]  }
  0x32   :  { %v3240_v51 = vpack.c.bf16 %v1093_v49, %v1091_v48  ;;  %v155_v54 = vpack.c.bf16 %v126_v53, %v124_v52  ;;  %v69_v55 = vpack.c.bf16 %v3076_v6, %v3071_v5  ;;  %v1462_v57 = vrot.slane %v3076_v6, 4  ;;  %v2899_v5 = vld [vmem:[#allocation2 + $0x60] ss:$12 sps:$4 sm:$0xff]   ;;  %v2902_v6 = vld [vmem:[#allocation2 + $0xb0] ss:$12 sps:$4 sm:$0xff]  }
  0x33   :  { %v1464_v61 = vrot.slane %v3081_v7, 4  ;;  %vm1460_vm4 = vcmask 1043456   ;;  %v1466_v11 = vrot.slane %v3105_v15, 4  ;;  %v1468_v16 = vrot.slane %v3118_v25, 4  ;;  %v2905_v49 = vld [vmem:[#allocation2 + $0xa8] ss:$12 sps:$4 sm:$0xff]  }
  0x34   :  { %v73_v19 = vpack.c.bf16 %v3188_v62, %v3182_v60  ;;  %v74_v24 = vpack.c.bf16 %v3211_v20, %v3193_v63  ;;  %v75_v26 = vpack.c.bf16 %v3094_v12, %v3087_v9  ;;  %v716_v35 = vrot.slane %v3182_v60, 2 }
  0x35   :  { %v1465_v3 = vsel %vm1460_vm4, %v1462_v57, %v1464_v61  ;;  %v1467_v21 = vsel %vm1460_vm4, %v1464_v61, %v1466_v11  ;;  %v718_v42 = vrot.slane %v3188_v62, 2  ;;  %v722_v52 = vrot.slane %v3211_v20, 2 }
  0x36   :  { %v724_v53 = vrot.slane %v3087_v9, 2  ;;  %v726_v61 = vrot.slane %v3094_v12, 2  ;;  %vm2135_vm5 = vcmask 1041409   ;;  %vm2137_vm6 = vcmask 1042434  }
  0x37   :  { %2538 = vmatmul.mubr.msk.bf16.gmra.mxu0 %vm199_vm1, %v152_v2  ;;  %2772 = vmatmul.mubr.msk.bf16.vlgmr.msra.gmra.mxu1 %vm199_vm1, %v151_v46  ;;  %v3232_v46 = vpack.c.bf16 %v1089_v45, %v1087_v44  ;;  %v720_v44 = vrot.slane %v3193_v63, 2  ;;  %v719_v45 = vsel %vm700_vm2, %v716_v35, %v718_v42  ;;  %vm2139_vm7 = vcmask 1043459  }
  0x38   :  { %503 = vmatpush1.bf16.msra.mxu1 %v2888_v4  ;;  %286 = vmatprep.mubr.bf16.mxu0 %v3023_v0  ;;  %vm2141_vm8 = vcmask 1044484   ;;  %vm2143_vm9 = vcmask 1045509   ;;  %vm2145_vm10 = vcmask 1046534   ;;  %vm2147_vm11 = vcmask 1047559  }
  0x39   :  { %2775 = vmatprep.mubr.msk.bf16.mxu1 %vm199_vm1, %v152_v2  ;;  %504 = vmatprep.subr.bf16.mxu1 %v2894_v17  ;;  %v1463_v2 = vsel %vm1460_vm4, %v1461_v56, %v1462_v57  ;;  %v72_v17 = vpack.c.bf16 %v3175_v58, %v3148_v40  ;;  %v2914_v56 = vld [vmem:[#allocation2 + $0xe0] ss:$12 sps:$4 sm:$0xff]  }
  0x3a   :  { %v3269_v4 = vpack.c.bf16 %v1465_v3, %v1463_v2  ;;  %v730_v3 = vrot.slane %v3124_v27, 2 }
  0x3c   :  { %505 = vmatpush1.bf16.msra.mxu1 %v2892_v22  ;;  %v1469_v22 = vsel %vm1460_vm4, %v1466_v11, %v1468_v16  ;;  %v1098_v11 = vrot.slane %v3188_v62, 3 }
  0x3d   :  { %2807 = vmatprep.subr.bf16.mxu1 %v2898_v31  ;;  %v3283_v23 = vpack.c.bf16 %v1469_v22, %v1467_v21 }
  0x3f   :  { %2539 = vmatmul.mubr.msk.bf16.gmra.mxu0 %vm199_vm1, %v153_v34  ;;  %2776 = vmatmul.mubr.msk.bf16.gmra.mxu1 %vm199_vm1, %v153_v34  ;;  %v714_v34 = vrot.slane %v3175_v58, 2 }
  0x40   :  { %296 = vmatprep.mubr.bf16.mxu0 %v3023_v0  ;;  %2779 = vmatprep.mubr.msk.bf16.mxu1 %vm199_vm1, %v154_v38 }
  0x41   :  { %v715_v37 = vsel %vm700_vm2, %v712_v1, %v714_v34  ;;  %v721_v1 = vsel %vm700_vm2, %v718_v42, %v720_v44  ;;  %v1110_v42 = vrot.slane %v3124_v27, 3 }
  0x42   :  { %v753_v48 = vpack.c.bf16 %v721_v1, %v719_v45  ;;  %v1476_v1 = vrot.slane %v3182_v60, 4 }
  0x47   :  { %2540 = vmatmul.mubr.msk.bf16.gmra.mxu0 %vm199_vm1, %v154_v38  ;;  %2780 = vmatmul.mubr.msk.bf16.gmra.mxu1 %vm199_vm1, %v155_v54  ;;  %v717_v38 = vsel %vm700_vm2, %v714_v34, %v716_v35 }
  0x48   :  { %306 = vmatprep.mubr.bf16.mxu0 %v3023_v0  ;;  %2783 = vmatprep.mubr.msk.bf16.mxu1 %vm199_vm1, %v3126_v28  ;;  %v70_v28 = vpack.c.bf16 %v3105_v15, %v3081_v7  ;;  %v2907_v7 = vld [vmem:[#allocation2 + $0xac] ss:$12 sps:$4 sm:$0xff]   ;;  %v1470_v15 = vrot.slane %v3143_v39, 4  ;;  %v752_v41 = vpack.c.bf16 %v717_v38, %v715_v37 }
  0x4a   :  { %v1471_v29 = vsel %vm1460_vm4, %v1468_v16, %v1470_v15  ;;  %v1100_v16 = vrot.slane %v3193_v63, 3 }
  0x4f   :  { %2541 = vmatmul.mubr.msk.bf16.gmra.mxu0 %vm199_vm1, %v155_v54  ;;  %2784 = vmatmul.mubr.msk.bf16.gmra.mxu1 %vm199_vm1, %v3155_v47  ;;  %v71_v47 = vpack.c.bf16 %v3143_v39, %v3118_v25  ;;  %v1472_v25 = vrot.slane %v3148_v40, 4  ;;  %v76_v39 = vpack.c.bf16 %v3124_v27, %v3099_v13  ;;  %v2910_v54 = vld [vmem:[#allocation2 + $0x94] ss:$12 sps:$4 sm:$0xff]  }
  0x50   :  { %522 = vmatprep.mubr.bf16.mxu1 %v3023_v0  ;;  %2791 = vmatprep.mubr.msk.bf16.mxu0 %vm199_vm1, %v69_v55 }
  0x51   :  { %v1473_v30 = vsel %vm1460_vm4, %v1470_v15, %v1472_v25  ;;  %v2915_v15 = vld [vmem:[#allocation2 + $0xc0] ss:$12 sps:$4 sm:$0xff]  }
  0x57   :  { %2558 = vmatmul.mubr.msk.bf16.vlgmr.msra.gmra.mxu1 %vm199_vm1, %v69_v55  ;;  %2792 = vmatmul.mubr.msk.bf16.vlgmr.msra.gmra.mxu0 %vm199_vm1, %v70_v28  ;;  %v725_v55 = vsel %vm700_vm2, %v722_v52, %v724_v53 }
  0x58   :  { %835 = vmatpush1.bf16.msra.mxu0 %v2895_v14  ;;  %2808 = vmatpush3.bf16.msra.mxu1 %v2898_v31  ;;  %v3299_v31 = vpack.c.bf16 %v1473_v30, %v1471_v29  ;;  %v2908_v14 = vld [vmem:[#allocation2 + $0x90] ss:$12 sps:$4 sm:$0xff]   ;;  %v1102_v30 = vrot.slane %v3211_v20, 3 }
  0x59   :  { %532 = vmatprep.mubr.bf16.mxu1 %v3023_v0  ;;  %2795 = vmatprep.mubr.msk.bf16.mxu0 %vm199_vm1, %v71_v47 }
  0x5a   :  { %836 = vmatprep.subr.bf16.mxu0 %v2901_v8  ;;  %2809 = vmatprep.subr.bf16.mxu1 %v2903_v10  ;;  %v748_v8 = vsel %vm700_vm2, %v730_v3, 0.0 }
  0x5c   :  { %837 = vmatpush1.bf16.msra.mxu0 %v2899_v5  ;;  %2810 = vmatpush3.bf16.msra.mxu1 %v2903_v10  ;;  %v2911_v5 = vld [vmem:[#allocation2 + $0xd8] ss:$12 sps:$4 sm:$0xff]  }
  0x5d   :  { %2827 = vmatprep.subr.bf16.mxu0 %v2902_v6  ;;  %1214 = vmatprep.subr.bf16.mxu1 %v2907_v7  ;;  %v1096_v7 = vrot.slane %v3182_v60, 3 }
  0x5f   :  { %2559 = vmatmul.mubr.msk.bf16.gmra.mxu1 %vm199_vm1, %v70_v28  ;;  %2796 = vmatmul.mubr.msk.bf16.gmra.mxu0 %vm199_vm1, %v72_v17  ;;  %v728_v28 = vrot.slane %v3099_v13, 2 }
  0x60   :  { %542 = vmatprep.mubr.bf16.mxu1 %v3023_v0  ;;  %2799 = vmatprep.mubr.msk.bf16.mxu0 %vm199_vm1, %v73_v19 }
  0x67   :  { %2560 = vmatmul.mubr.msk.bf16.gmra.mxu1 %vm199_vm1, %v71_v47  ;;  %2800 = vmatmul.mubr.msk.bf16.gmra.mxu0 %vm199_vm1, %v74_v24  ;;  %v731_v47 = vsel %vm700_vm2, %v728_v28, %v730_v3 }
  0x68   :  { %552 = vmatprep.mubr.bf16.mxu1 %v3023_v0  ;;  %2803 = vmatprep.mubr.msk.bf16.mxu0 %vm199_vm1, %v75_v26  ;;  %v756_v10 = vpack.c.bf16 %v748_v8, %v731_v47  ;;  %v1482_v47 = vrot.slane %v3211_v20, 4  ;;  %v1484_v8 = vrot.slane %v3087_v9, 4 }
  0x6f   :  { %2561 = vmatmul.mubr.msk.bf16.gmra.mxu1 %vm199_vm1, %v72_v17  ;;  %2804 = vmatmul.mubr.msk.bf16.gmra.mxu0 %vm199_vm1, %v76_v39  ;;  %v2917_v17 = vld [vmem:[#allocation2 + $0xc4] ss:$12 sps:$4 sm:$0xff]  }
  0x70   :  { %562 = vmatprep.mubr.bf16.mxu1 %v3023_v0  ;;  %854 = vmatprep.mubr.bf16.mxu0 %v3023_v0 }
  0x77   :  { %2562 = vmatmul.mubr.msk.bf16.gmra.mxu1 %vm199_vm1, %v73_v19  ;;  %2580 = vmatmul.mubr.msk.bf16.vlgmr.msra.gmra.mxu0 %vm199_vm1, %v3159_v50  ;;  %v2918_v19 = vld [vmem:[#allocation2 + $0xc8] ss:$12 sps:$4 sm:$0xff]  }
  0x78   :  { %2828 = vmatpush3.bf16.msra.mxu0 %v2902_v6  ;;  %572 = vmatprep.mubr.bf16.mxu1 %v3023_v0  ;;  %v1094_v6 = vrot.slane %v3175_v58, 3 }
  0x79   :  { %864 = vmatprep.mubr.bf16.mxu0 %v3023_v0  ;;  %2829 = vmatprep.subr.bf16.mxu0 %v2904_v32 }
  0x7a   :  { %v1095_v21 = vsel %vm1080_vm3, %v1092_v43, %v1094_v6  ;;  %v1097_v22 = vsel %vm1080_vm3, %v1094_v6, %v1096_v7  ;;  %v1104_v43 = vrot.slane %v3087_v9, 3  ;;  %v1485_v9 = vsel %vm1460_vm4, %v1482_v47, %v1484_v8 }
  0x7c   :  { %2830 = vmatpush3.bf16.msra.mxu0 %v2904_v32  ;;  %v1108_v32 = vrot.slane %v3099_v13, 3  ;;  %v1105_v34 = vsel %vm1080_vm3, %v1102_v30, %v1104_v43 }
  0x7d   :  { %1594 = vmatprep.subr.bf16.mxu0 %v2913_v33  ;;  %v1103_v33 = vsel %vm1080_vm3, %v1100_v16, %v1102_v30 }
  0x7e   :  { %v1134_v38 = vpack.c.bf16 %v1105_v34, %v1103_v33 }
  0x7f   :  { %2563 = vmatmul.mubr.msk.bf16.gmra.mxu1 %vm199_vm1, %v74_v24  ;;  %2581 = vmatmul.mubr.msk.bf16.gmra.mxu0 %vm199_vm1, %v3177_v59  ;;  %v1099_v24 = vsel %vm1080_vm3, %v1096_v7, %v1098_v11 }
  0x80   :  { %582 = vmatprep.mubr.bf16.mxu1 %v3023_v0  ;;  %874 = vmatprep.mubr.bf16.mxu0 %v3023_v0 }
  0x87   :  { %2564 = vmatmul.mubr.msk.bf16.gmra.mxu1 %vm199_vm1, %v75_v26  ;;  %2582 = vmatmul.mubr.msk.bf16.gmra.mxu0 %vm199_vm1, %v3203_v18  ;;  %v1132_v26 = vpack.c.bf16 %v1097_v22, %v1095_v21  ;;  %v1486_v21 = vrot.slane %v3094_v12, 4 }
  0x88   :  { %592 = vmatprep.mubr.bf16.mxu1 %v3023_v0  ;;  %884 = vmatprep.mubr.bf16.mxu0 %v3023_v0 }
  0x8f   :  { %2565 = vmatmul.mubr.msk.bf16.gmra.mxu1 %vm199_vm1, %v76_v39  ;;  %2583 = vmatmul.mubr.msk.bf16.gmra.mxu0 %vm199_vm1, %v752_v41  ;;  %v1106_v39 = vrot.slane %v3094_v12, 3 }
  0x90   :  { %894 = vmatprep.mubr.bf16.mxu0 %v3023_v0  ;;  %2811 = vmatprep.mubr.msk.bf16.mxu1 %vm199_vm1, %v3159_v50  ;;  %v723_v50 = vsel %vm700_vm2, %v720_v44, %v722_v52  ;;  %v1128_v44 = vsel %vm1080_vm3, %v1110_v42, 0.0 }
  0x91   :  { %v754_v57 = vpack.c.bf16 %v725_v55, %v723_v50  ;;  %v1107_v35 = vsel %vm1080_vm3, %v1104_v43, %v1106_v39  ;;  %v1109_v37 = vsel %vm1080_vm3, %v1106_v39, %v1108_v32  ;;  %v1490_v39 = vrot.slane %v3124_v27, 4 }
  0x97   :  { %2584 = vmatmul.mubr.msk.bf16.gmra.mxu0 %vm199_vm1, %v753_v48  ;;  %2812 = vmatmul.mubr.msk.bf16.vlgmr.msra.gmra.mxu1 %vm199_vm1, %v3177_v59  ;;  %v727_v59 = vsel %vm700_vm2, %v724_v53, %v726_v61 }
  0x98   :  { %1215 = vmatpush1.bf16.msra.mxu1 %v2905_v49  ;;  %904 = vmatprep.mubr.bf16.mxu0 %v3023_v0 }
  0x99   :  { %2815 = vmatprep.mubr.msk.bf16.mxu1 %vm199_vm1, %v3203_v18  ;;  %1216 = vmatprep.subr.bf16.mxu1 %v2910_v54  ;;  %v729_v18 = vsel %vm700_vm2, %v726_v61, %v728_v28 }
  0x9a   :  { %v755_v2 = vpack.c.bf16 %v729_v18, %v727_v59 }
  0x9c   :  { %1217 = vmatpush1.bf16.msra.mxu1 %v2908_v14  ;;  %v1478_v14 = vrot.slane %v3188_v62, 4 }
  0x9d   :  { %2847 = vmatprep.subr.bf16.mxu1 %v2914_v56 }
  0x9e   :  { %v1479_v62 = vsel %vm1460_vm4, %v1476_v1, %v1478_v14 }
  0x9f   :  { %2585 = vmatmul.mubr.msk.bf16.gmra.mxu0 %vm199_vm1, %v754_v57  ;;  %2816 = vmatmul.mubr.msk.bf16.gmra.mxu1 %vm199_vm1, %v752_v41  ;;  %v1135_v41 = vpack.c.bf16 %v1109_v37, %v1107_v35 }
  0xa0   :  { %914 = vmatprep.mubr.bf16.mxu0 %v3023_v0  ;;  %2819 = vmatprep.mubr.msk.bf16.mxu1 %vm199_vm1, %v753_v48 }
  0xa7   :  { %2586 = vmatmul.mubr.msk.bf16.gmra.mxu0 %vm199_vm1, %v755_v2  ;;  %2820 = vmatmul.mubr.msk.bf16.gmra.mxu1 %vm199_vm1, %v754_v57 }
  0xa8   :  { %924 = vmatprep.mubr.bf16.mxu0 %v3023_v0  ;;  %2823 = vmatprep.mubr.msk.bf16.mxu1 %vm199_vm1, %v755_v2 }
  0xaf   :  { %2587 = vmatmul.mubr.msk.bf16.gmra.mxu0 %vm199_vm1, %v756_v10  ;;  %2824 = vmatmul.mubr.msk.bf16.gmra.mxu1 %vm199_vm1, %v756_v10 }
  0xb0   :  { %1234 = vmatprep.mubr.bf16.mxu1 %v3023_v0  ;;  %2831 = vmatprep.mubr.msk.bf16.mxu0 %vm199_vm1, %v3224_v36 }
  0xb7   :  { %2602 = vmatmul.mubr.msk.bf16.vlgmr.msra.gmra.mxu1 %vm199_vm1, %v3224_v36  ;;  %2832 = vmatmul.mubr.msk.bf16.vlgmr.msra.gmra.mxu0 %vm199_vm1, %v3232_v46  ;;  %v1101_v36 = vsel %vm1080_vm3, %v1098_v11, %v1100_v16 }
  0xb8   :  { %1595 = vmatpush1.bf16.msra.mxu0 %v2911_v5  ;;  %2848 = vmatpush3.bf16.msra.mxu1 %v2914_v56  ;;  %v1133_v29 = vpack.c.bf16 %v1101_v36, %v1099_v24  ;;  %v1480_v56 = vrot.slane %v3193_v63, 4  ;;  %v1487_v36 = vsel %vm1460_vm4, %v1484_v8, %v1486_v21 }
  0xb9   :  { %1244 = vmatprep.mubr.bf16.mxu1 %v3023_v0  ;;  %2835 = vmatprep.mubr.msk.bf16.mxu0 %vm199_vm1, %v3240_v51 }
  0xba   :  { %1596 = vmatprep.subr.bf16.mxu0 %v2917_v17  ;;  %2849 = vmatprep.subr.bf16.mxu1 %v2918_v19  ;;  %v1481_v63 = vsel %vm1460_vm4, %v1478_v14, %v1480_v56  ;;  %v1483_v20 = vsel %vm1460_vm4, %v1480_v56, %v1482_v47 }
  0xbb   :  { %v1513_v3 = vpack.c.bf16 %v1481_v63, %v1479_v62 }
  0xbc   :  { %1597 = vmatpush1.bf16.msra.mxu0 %v2915_v15  ;;  %2850 = vmatpush3.bf16.msra.mxu1 %v2918_v19  ;;  %v1514_v19 = vpack.c.bf16 %v1485_v9, %v1483_v20 }
  0xbf   :  { %2603 = vmatmul.mubr.msk.bf16.gmra.mxu1 %vm199_vm1, %v3232_v46  ;;  %2836 = vmatmul.mubr.msk.bf16.gmra.mxu0 %vm199_vm1, %v1132_v26  ;;  %v1111_v46 = vsel %vm1080_vm3, %v1108_v32, %v1110_v42 }
  0xc0   :  { %1254 = vmatprep.mubr.bf16.mxu1 %v3023_v0  ;;  %2839 = vmatprep.mubr.msk.bf16.mxu0 %vm199_vm1, %v1133_v29  ;;  %v1136_v45 = vpack.c.bf16 %v1128_v44, %v1111_v46 }
  0xc7   :  { %2604 = vmatmul.mubr.msk.bf16.gmra.mxu1 %vm199_vm1, %v3240_v51  ;;  %2840 = vmatmul.mubr.msk.bf16.gmra.mxu0 %vm199_vm1, %v1134_v38  ;;  %v1474_v51 = vrot.slane %v3175_v58, 4 }
  0xc8   :  { %1264 = vmatprep.mubr.bf16.mxu1 %v3023_v0  ;;  %2843 = vmatprep.mubr.msk.bf16.mxu0 %vm199_vm1, %v1135_v41 }
  0xc9   :  { %v1475_v52 = vsel %vm1460_vm4, %v1472_v25, %v1474_v51  ;;  %v1477_v58 = vsel %vm1460_vm4, %v1474_v51, %v1476_v1 }
  0xca   :  { %v1512_v55 = vpack.c.bf16 %v1477_v58, %v1475_v52 }
  0xcf   :  { %2605 = vmatmul.mubr.msk.bf16.gmra.mxu1 %vm199_vm1, %v1132_v26  ;;  %2844 = vmatmul.mubr.msk.bf16.gmra.mxu0 %vm199_vm1, %v1136_v45 }
  0xd0   :  { %1274 = vmatprep.mubr.bf16.mxu1 %v3023_v0  ;;  %1614 = vmatprep.mubr.bf16.mxu0 %v3023_v0 }
  0xd7   :  { %2606 = vmatmul.mubr.msk.bf16.gmra.mxu1 %vm199_vm1, %v1133_v29  ;;  %2624 = vmatmul.mubr.msk.bf16.vlgmr.msra.gmra.mxu0 %vm199_vm1, %v3269_v4 }
  0xd8   :  { %1284 = vmatprep.mubr.bf16.mxu1 %v3023_v0  ;;  %1624 = vmatprep.mubr.bf16.mxu0 %v3023_v0 }
  0xdf   :  { %2607 = vmatmul.mubr.msk.bf16.gmra.mxu1 %vm199_vm1, %v1134_v38  ;;  %2625 = vmatmul.mubr.msk.bf16.gmra.mxu0 %vm199_vm1, %v3283_v23  ;;  %v1508_v38 = vsel %vm1460_vm4, %v1490_v39, 0.0 }
  0xe0   :  { %1294 = vmatprep.mubr.bf16.mxu1 %v3023_v0  ;;  %1634 = vmatprep.mubr.bf16.mxu0 %v3023_v0 }
  0xe7   :  { %v3425_v48 = vpop.f32.mrf.mxu0  ;;  %v3427_v49 = vpop.f32.mrf.mxu1  ;;  %2608 = vmatmul.mubr.msk.bf16.gmra.mxu1 %vm199_vm1, %v1135_v41  ;;  %2626 = vmatmul.mubr.msk.bf16.gmra.mxu0 %vm199_vm1, %v3299_v31 }
  0xe8   :  { %1304 = vmatprep.mubr.bf16.mxu1 %v3023_v0  ;;  %1644 = vmatprep.mubr.bf16.mxu0 %v3023_v0 }
  0xe9   :  { %v3438_v60 = vpop.f32.mrf.mxu0  ;;  %v3440_v53 = vpop.f32.mrf.mxu1 }
  0xeb   :  { %v3442_v54 = vpop.f32.mrf.mxu0  ;;  %v3444_v50 = vpop.f32.mrf.mxu1 }
  0xed   :  { %v3448_v57 = vpop.f32.mrf.mxu0  ;;  %v3450_v40 = vpop.f32.mrf.mxu1 }
  0xef   :  { %v3452_v25 = vpop.f32.mrf.mxu0  ;;  %v3454_v61 = vpop.f32.mrf.mxu1  ;;  %2609 = vmatmul.mubr.msk.bf16.gmra.mxu1 %vm199_vm1, %v1136_v45  ;;  %2627 = vmatmul.mubr.msk.bf16.gmra.mxu0 %vm199_vm1, %v1512_v55 }
  0xf0   :  { %1654 = vmatprep.mubr.bf16.mxu0 %v3023_v0  ;;  %2851 = vmatprep.mubr.msk.bf16.mxu1 %vm199_vm1, %v3269_v4 }
  0xf1   :  { %v3463_v28 = vpop.f32.mrf.mxu0  ;;  %v3465_v59 = vpop.f32.mrf.mxu1 }
  0xf3   :  { %v3467_v18 = vpop.f32.mrf.mxu0  ;;  %v3469_v2 = vpop.f32.mrf.mxu1 }
  0xf5   :  { %v3473_v10 = vpop.f32.mrf.mxu0  ;;  %v3475_v4 = vpop.f32.mrf.mxu1 }
  0xf7   :  { %v3477_v5 = vpop.f32.mrf.mxu0  ;;  %v2773_v6 = vpop.f32.mrf.mxu1  ;;  %2628 = vmatmul.mubr.msk.bf16.gmra.mxu0 %vm199_vm1, %v1513_v3  ;;  %2852 = vmatmul.mubr.msk.bf16.vlgmr.msra.gmra.mxu1 %vm199_vm1, %v3283_v23  ;;  %v1488_v23 = vrot.slane %v3099_v13, 4 }
  0xf8   :  { %1664 = vmatprep.mubr.bf16.mxu0 %v3023_v0  ;;  %2855 = vmatprep.mubr.msk.bf16.mxu1 %vm199_vm1, %v3299_v31 }
  0xf9   :  { %v3487_v7 = vpop.f32.mrf.mxu0  ;;  %v371_v11 = vpop.f32.mrf.mxu1  ;;  %v1489_v12 = vsel %vm1460_vm4, %v1486_v21, %v1488_v23  ;;  %v1491_v37 = vsel %vm1460_vm4, %v1488_v23, %v1490_v39 }
  0xfa   :  { %v1515_v43 = vpack.c.bf16 %v1489_v12, %v1487_v36  ;;  %v1516_v44 = vpack.c.bf16 %v1508_v38, %v1491_v37 }
  0xfb   :  { %v3489_v16 = vpop.f32.mrf.mxu0  ;;  %v2774_v17 = vpop.f32.mrf.mxu1 }
  0xfd   :  { %v3493_v22 = vpop.f32.mrf.mxu0  ;;  %v3495_v15 = vpop.f32.mrf.mxu1 }
  0xff   :  { %v3497_v31 = vpop.f32.mrf.mxu0  ;;  %v2777_v24 = vpop.f32.mrf.mxu1  ;;  %2629 = vmatmul.mubr.msk.bf16.gmra.mxu0 %vm199_vm1, %v1514_v19  ;;  %2856 = vmatmul.mubr.msk.bf16.gmra.mxu1 %vm199_vm1, %v1512_v55 }
 0x100   :  { %1674 = vmatprep.mubr.bf16.mxu0 %v3023_v0  ;;  %2859 = vmatprep.mubr.msk.bf16.mxu1 %vm199_vm1, %v1513_v3 }
 0x101   :  { %v3505_v13 = vpop.f32.mrf.mxu0  ;;  %v387_v26 = vpop.f32.mrf.mxu1 }
 0x103   :  { %v3507_v29 = vpop.f32.mrf.mxu0  ;;  %v2778_v30 = vpop.f32.mrf.mxu1 }
 0x105   :  { %v3510_v32 = vpop.f32.mrf.mxu0  ;;  %v390_v33 = vpop.f32.mrf.mxu1 }
 0x107   :  { %v3512_v34 = vpop.f32.mrf.mxu0  ;;  %v2781_v35 = vpop.f32.mrf.mxu1  ;;  %2630 = vmatmul.mubr.msk.bf16.gmra.mxu0 %vm199_vm1, %v1515_v43  ;;  %2860 = vmatmul.mubr.msk.bf16.gmra.mxu1 %vm199_vm1, %v1514_v19 }
 0x108   :  { %1684 = vmatprep.mubr.bf16.mxu0 %v3023_v0  ;;  %2863 = vmatprep.mubr.msk.bf16.mxu1 %vm199_vm1, %v1515_v43 }
 0x109   :  { %v3520_v41 = vpop.f32.mrf.mxu0  ;;  %v403_v27 = vpop.f32.mrf.mxu1 }
 0x10b   :  { %v3522_v42 = vpop.f32.mrf.mxu0  ;;  %v2782_v46 = vpop.f32.mrf.mxu1 }
 0x10d   :  { %v3524_v45 = vpop.f32.mrf.mxu0  ;;  %v406_v51 = vpop.f32.mrf.mxu1 }
 0x10f   :  { %v3526_v1 = vpop.f32.mrf.mxu0  ;;  %v2785_v52 = vpop.f32.mrf.mxu1  ;;  %2631 = vmatmul.mubr.msk.bf16.gmra.mxu0 %vm199_vm1, %v1516_v44  ;;  %2864 = vmatmul.mubr.msk.bf16.gmra.mxu1 %vm199_vm1, %v1516_v44 }
 0x111   :  { %v3530_v0 = vpop.f32.mrf.mxu0  ;;  %v419_v58 = vpop.f32.mrf.mxu1 }
 0x113   :  { %v3532_v55 = vpop.f32.mrf.mxu0  ;;  %v2786_v14 = vpop.f32.mrf.mxu1 }
 0x115   :  { %v3534_v56 = vpop.f32.mrf.mxu0  ;;  %v422_v62 = vpop.f32.mrf.mxu1 }
 0x117   :  { %v524_v63 = vpop.f32.mrf.mxu1  ;;  %v2793_v3 = vpop.f32.mrf.mxu0 }
 0x118   :  { %v3537_v47 = vadd.f32 %v524_v63, %v3425_v48  ;;  %v3539_v8 = vadd.f32 %v2793_v3, %v2773_v6 }
 0x119   :  { %v526_v20 = vpop.f32.mrf.mxu1  ;;  %v637_v9 = vpop.f32.mrf.mxu0 }
 0x11a   :  { %v3542_v19 = vadd.f32 %v526_v20, %v3438_v60  ;;  %v3544_v21 = vadd.f32 %v637_v9, %v371_v11 }
 0x11b   :  { %v528_v23 = vpop.f32.mrf.mxu1  ;;  %v2794_v36 = vpop.f32.mrf.mxu0 }
 0x11c   :  { %v3547_v12 = vadd.f32 %v528_v23, %v3442_v54  ;;  %v3549_v43 = vadd.f32 %v2794_v36, %v2774_v17 }
 0x11d   :  { %v530_v39 = vpop.f32.mrf.mxu1  ;;  %v3551_v37 = vpop.f32.mrf.mxu0 }
 0x11e   :  { %v3554_v48 = vadd.f32 %v530_v39, %v3448_v57 }
 0x11f   :  { %v534_v6 = vpop.f32.mrf.mxu1  ;;  %v2797_v38 = vpop.f32.mrf.mxu0 }
 0x120   :  { %v3557_v60 = vadd.f32 %v534_v6, %v3452_v25  ;;  %v3559_v11 = vadd.f32 %v2797_v38, %v2777_v24 }
 0x121   :  { %v536_v44 = vpop.f32.mrf.mxu1  ;;  %v653_v63 = vpop.f32.mrf.mxu0 }
 0x122   :  { %v3562_v54 = vadd.f32 %v536_v44, %v3463_v28  ;;  %v3564_v17 = vadd.f32 %v653_v63, %v387_v26 }
 0x123   :  { %v538_v3 = vpop.f32.mrf.mxu1  ;;  %v2798_v20 = vpop.f32.mrf.mxu0 }
 0x124   :  { %v3567_v9 = vadd.f32 %v538_v3, %v3467_v18  ;;  %v3569_v57 = vadd.f32 %v2798_v20, %v2778_v30 }
 0x125   :  { %v540_v23 = vpop.f32.mrf.mxu1  ;;  %v656_v36 = vpop.f32.mrf.mxu0 }
 0x126   :  { %v3572_v25 = vadd.f32 %v540_v23, %v3473_v10  ;;  %v3574_v24 = vadd.f32 %v656_v36, %v390_v33 }
 0x127   :  { %v544_v39 = vpop.f32.mrf.mxu1  ;;  %v2801_v6 = vpop.f32.mrf.mxu0 }
 0x128   :  { %v3577_v28 = vadd.f32 %v544_v39, %v3477_v5  ;;  %v3579_v26 = vadd.f32 %v2801_v6, %v2781_v35 }
 0x129   :  { %v546_v38 = vpop.f32.mrf.mxu1  ;;  %v669_v44 = vpop.f32.mrf.mxu0 }
 0x12a   :  { %v3582_v18 = vadd.f32 %v546_v38, %v3487_v7  ;;  %v3584_v30 = vadd.f32 %v669_v44, %v403_v27 }
 0x12b   :  { %v548_v63 = vpop.f32.mrf.mxu1  ;;  %v2802_v3 = vpop.f32.mrf.mxu0 }
 0x12c   :  { %v3587_v10 = vadd.f32 %v548_v63, %v3489_v16  ;;  %v3589_v33 = vadd.f32 %v2802_v3, %v2782_v46 }
 0x12d   :  { %v3591_v20 = vpop.f32.mrf.mxu1  ;;  %v672_v5 = vpop.f32.mrf.mxu0 }
 0x12e   :  { %v3593_v23 = vadd.f32 %v672_v5, %v406_v51 }
 0x12f   :  { %v554_v35 = vpop.f32.mrf.mxu1  ;;  %v2805_v36 = vpop.f32.mrf.mxu0 }
 0x130   :  { %v3596_v39 = vadd.f32 %v554_v35, %v3497_v31  ;;  %v3598_v7 = vadd.f32 %v2805_v36, %v2785_v52 }
 0x131   :  { %v556_v27 = vpop.f32.mrf.mxu1  ;;  %v685_v6 = vpop.f32.mrf.mxu0 }
 0x132   :  { %v3601_v38 = vadd.f32 %v556_v27, %v3505_v13  ;;  %v3603_v16 = vadd.f32 %v685_v6, %v419_v58 }
 0x133   :  { %v558_v46 = vpop.f32.mrf.mxu1  ;;  %v2806_v44 = vpop.f32.mrf.mxu0 }
 0x134   :  { %v3606_v63 = vadd.f32 %v558_v46, %v3507_v29  ;;  %v3608_v51 = vadd.f32 %v2806_v44, %v2786_v14 }
 0x135   :  { %v560_v3 = vpop.f32.mrf.mxu1  ;;  %v688_v5 = vpop.f32.mrf.mxu0 }
 0x136   :  { %v3611_v31 = vadd.f32 %v560_v3, %v3510_v32  ;;  %v3613_v52 = vadd.f32 %v688_v5, %v422_v62 }
 0x137   :  { %v564_v35 = vpop.f32.mrf.mxu1  ;;  %v856_v36 = vpop.f32.mrf.mxu0 }
 0x138   :  { %v3616_v13 = vadd.f32 %v564_v35, %v3512_v34  ;;  %v3619_v58 = vadd.f32 %v856_v36, %v3537_v47 }
 0x139   :  { %v566_v27 = vpop.f32.mrf.mxu1  ;;  %v858_v29 = vpop.f32.mrf.mxu0 }
 0x13a   :  { %v3622_v14 = vadd.f32 %v566_v27, %v3520_v41  ;;  %v3625_v6 = vadd.f32 %v858_v29, %v3542_v19  ;;  %v2920_v29 = vld [vmem:[#allocation5 + $0xb8] sm:$0xff]  }
 0x13b   :  { %v568_v32 = vpop.f32.mrf.mxu1  ;;  %v860_v46 = vpop.f32.mrf.mxu0 }
 0x13c   :  { %v3628_v62 = vadd.f32 %v568_v32, %v3522_v42  ;;  %v3631_v44 = vadd.f32 %v860_v46, %v3547_v12  ;;  %v2919_v12 = vld [vmem:[#allocation5 + $0xf8] sm:$0xff]  }
 0x13d   :  { %v570_v34 = vpop.f32.mrf.mxu1  ;;  %v862_v3 = vpop.f32.mrf.mxu0  ;;  %2745 = vmatprep.subr.bf16.mxu0 %v2919_v12  ;;  %v2922_v12 = vld [vmem:[#allocation5 + $0xb0] sm:$0xff]  }
 0x13e   :  { %v3634_v47 = vadd.f32 %v570_v34, %v3524_v45  ;;  %v3637_v5 = vadd.f32 %v862_v3, %v3554_v48  ;;  %2746 = vmatpush3.bf16.msra.mxu0 %v2920_v29 }
 0x13f   :  { %v574_v41 = vpop.f32.mrf.mxu1  ;;  %v866_v35 = vpop.f32.mrf.mxu0 }
 0x140   :  { %v3640_v19 = vadd.f32 %v574_v41, %v3526_v1  ;;  %v3643_v36 = vadd.f32 %v866_v35, %v3557_v60 }
 0x141   :  { %v576_v42 = vpop.f32.mrf.mxu1  ;;  %v868_v27 = vpop.f32.mrf.mxu0 }
 0x142   :  { %v3646_v32 = vadd.f32 %v576_v42, %v3530_v0  ;;  %v3649_v45 = vadd.f32 %v868_v27, %v3562_v54 }
 0x143   :  { %v578_v48 = vpop.f32.mrf.mxu1  ;;  %v870_v46 = vpop.f32.mrf.mxu0 }
 0x144   :  { %v3652_v34 = vadd.f32 %v578_v48, %v3532_v55  ;;  %v3655_v1 = vadd.f32 %v870_v46, %v3567_v9  ;;  %v2921_v9 = vld [vmem:[#allocation5 + $0xf0] sm:$0xff]  }
 0x145   :  { %v580_v60 = vpop.f32.mrf.mxu1  ;;  %v872_v3 = vpop.f32.mrf.mxu0  ;;  %2747 = vmatprep.subr.bf16.mxu0 %v2921_v9 }
 0x146   :  { %v3658_v41 = vadd.f32 %v580_v60, %v3534_v56  ;;  %v3661_v0 = vadd.f32 %v872_v3, %v3572_v25  ;;  %v551_v25 = vadd.f32 %v3591_v20, %v3493_v22  ;;  %2748 = vmatpush3.bf16.msra.mxu0 %v2922_v12 }
 0x147   :  { %v3663_v54 = vpop.f32.mrf.mxu1  ;;  %v876_v35 = vpop.f32.mrf.mxu0 }
 0x148   :  { %v3666_v42 = vadd.f32 %v876_v35, %v3577_v28 }
 0x149   :  { %v3668_v55 = vpop.f32.mrf.mxu1  ;;  %v878_v27 = vpop.f32.mrf.mxu0 }
 0x14a   :  { %v3671_v29 = vadd.f32 %v878_v27, %v3582_v18 }
 0x14b   :  { %v3673_v48 = vpop.f32.mrf.mxu1  ;;  %v880_v56 = vpop.f32.mrf.mxu0 }
 0x14c   :  { %4140 = vst [vmem:[#allocation11_spill] sm:$0xff] %v3671_v29  ;;  %v3678_v46 = vadd.f32 %v880_v56, %v3587_v10 }
 0x14d   :  { %v3680_v28 = vpop.f32.mrf.mxu1  ;;  %v882_v60 = vpop.f32.mrf.mxu0 }
 0x14e   :  { %4141 = vst [vmem:[#allocation12_spill] sm:$0xff] %v3678_v46  ;;  %v3682_v3 = vadd.f32 %v882_v60, %v551_v25 }
 0x14f   :  { %v3684_v35 = vpop.f32.mrf.mxu1  ;;  %v886_v18 = vpop.f32.mrf.mxu0 }
 0x150   :  { %4142 = vst [vmem:[#allocation13_spill] sm:$0xff] %v3682_v3  ;;  %v3687_v27 = vadd.f32 %v886_v18, %v3596_v39  ;;  %v2923_v39 = vld [vmem:[#allocation5 + $0xe8] sm:$0xff]  }
 0x151   :  { %v3689_v29 = vpop.f32.mrf.mxu1  ;;  %v888_v9 = vpop.f32.mrf.mxu0  ;;  %v2924_v18 = vld [vmem:[#allocation5 + $0xa8] sm:$0xff]   ;;  %2749 = vmatprep.subr.bf16.mxu0 %v2923_v39 }
 0x152   :  { %4143 = vst [vmem:[#allocation14_spill] sm:$0xff] %v3687_v27  ;;  %v3692_v22 = vadd.f32 %v888_v9, %v3601_v38  ;;  %2750 = vmatpush3.bf16.msra.mxu0 %v2924_v18  ;;  %v2928_v18 = vld [vmem:[#allocation5 + $0x38] sm:$0xff]  }
 0x153   :  { %v3694_v10 = vpop.f32.mrf.mxu1  ;;  %v890_v20 = vpop.f32.mrf.mxu0 }
 0x154   :  { %v3697_v12 = vadd.f32 %v890_v20, %v3606_v63 }
 0x155   :  { %v3699_v56 = vpop.f32.mrf.mxu1  ;;  %v892_v25 = vpop.f32.mrf.mxu0 }
 0x156   :  { %4144 = vst [vmem:[#allocation15_spill] sm:$0xff] %v3697_v12  ;;  %v3702_v60 = vadd.f32 %v892_v25, %v3611_v31  ;;  %v641_v12 = vadd.f32 %v3551_v37, %v3495_v15 }
 0x157   :  { %v896_v27 = vpop.f32.mrf.mxu0  ;;  %v2813_v3 = vpop.f32.mrf.mxu1 }
 0x158   :  { %4145 = vst [vmem:[#allocation16_spill] sm:$0xff] %v3702_v60  ;;  %v3705_v46 = vadd.f32 %v896_v27, %v3616_v13  ;;  %v3708_v38 = vadd.f32 %v2813_v3, %v3539_v8  ;;  %v2927_v3 = vld [vmem:[#allocation5 + $0x78] sm:$0xff]  }
 0x159   :  { %v898_v9 = vpop.f32.mrf.mxu0  ;;  %v969_v63 = vpop.f32.mrf.mxu1  ;;  %2723 = vmatprep.subr.bf16.mxu1 %v2927_v3 }
 0x15a   :  { %v3711_v20 = vadd.f32 %v898_v9, %v3622_v14  ;;  %v3714_v31 = vadd.f32 %v969_v63, %v3544_v21  ;;  %2724 = vmatpush3.bf16.msra.mxu1 %v2928_v18  ;;  %v2932_v18 = vld [vmem:[#allocation5 + $0x30] sm:$0xff]  }
 0x15b   :  { %v900_v25 = vpop.f32.mrf.mxu0  ;;  %v2814_v60 = vpop.f32.mrf.mxu1 }
 0x15c   :  { %v3719_v13 = vadd.f32 %v900_v25, %v3628_v62  ;;  %v3722_v8 = vadd.f32 %v2814_v60, %v3549_v43  ;;  %v2931_v25 = vld [vmem:[#allocation5 + $0x70] sm:$0xff]  }
 0x15d   :  { %v902_v27 = vpop.f32.mrf.mxu0  ;;  %v972_v39 = vpop.f32.mrf.mxu1  ;;  %2725 = vmatprep.subr.bf16.mxu1 %v2931_v25 }
 0x15e   :  { %v3725_v14 = vadd.f32 %v902_v27, %v3634_v47  ;;  %v3727_v21 = vadd.f32 %v972_v39, %v641_v12  ;;  %v2925_v12 = vld [vmem:[#allocation5 + $0xe0] sm:$0xff]   ;;  %2726 = vmatpush3.bf16.msra.mxu1 %v2932_v18 }
 0x15f   :  { %v906_v9 = vpop.f32.mrf.mxu0  ;;  %v2817_v63 = vpop.f32.mrf.mxu1  ;;  %v2926_v39 = vld [vmem:[#allocation5 + $0xa0] sm:$0xff]   ;;  %2751 = vmatprep.subr.bf16.mxu0 %v2925_v12 }
 0x160   :  { %v3730_v15 = vadd.f32 %v906_v9, %v3640_v19  ;;  %v3733_v37 = vadd.f32 %v2817_v63, %v3559_v11  ;;  %2752 = vmatpush3.bf16.msra.mxu0 %v2926_v39 }
 0x161   :  { %v908_v43 = vpop.f32.mrf.mxu0  ;;  %v985_v62 = vpop.f32.mrf.mxu1 }
 0x162   :  { %v3736_v60 = vadd.f32 %v908_v43, %v3646_v32  ;;  %v3739_v47 = vadd.f32 %v985_v62, %v3564_v17  ;;  %v585_v17 = vadd.f32 %v3663_v54, %v3427_v49  ;;  %v2934_v49 = vld [vmem:[#allocation5 + $0x28] sm:$0xff]  }
 0x163   :  { %v910_v3 = vpop.f32.mrf.mxu0  ;;  %v2818_v27 = vpop.f32.mrf.mxu1 }
 0x164   :  { %v3742_v19 = vadd.f32 %v910_v3, %v3652_v34  ;;  %v3745_v11 = vadd.f32 %v2818_v27, %v3569_v57  ;;  %v587_v57 = vadd.f32 %v3668_v55, %v3440_v53  ;;  %v2933_v3 = vld [vmem:[#allocation5 + $0x68] sm:$0xff]  }
 0x165   :  { %v912_v9 = vpop.f32.mrf.mxu0  ;;  %v988_v32 = vpop.f32.mrf.mxu1  ;;  %2727 = vmatprep.subr.bf16.mxu1 %v2933_v3  ;;  %v2930_v3 = vld [vmem:[#allocation5 + $0x98] sm:$0xff]  }
 0x166   :  { %v3750_v63 = vadd.f32 %v912_v9, %v3658_v41  ;;  %v3753_v43 = vadd.f32 %v988_v32, %v3574_v24  ;;  %v589_v41 = vadd.f32 %v3673_v48, %v3444_v50  ;;  %2728 = vmatpush3.bf16.msra.mxu1 %v2934_v49  ;;  %v2929_v32 = vld [vmem:[#allocation5 + $0xd8] sm:$0xff]  }
 0x167   :  { %v916_v34 = vpop.f32.mrf.mxu0  ;;  %v2821_v62 = vpop.f32.mrf.mxu1  ;;  %2753 = vmatprep.subr.bf16.mxu0 %v2929_v32 }
 0x168   :  { %v3757_v12 = vadd.f32 %v916_v34, %v585_v17  ;;  %v3760_v25 = vadd.f32 %v2821_v62, %v3579_v26  ;;  %v591_v26 = vadd.f32 %v3680_v28, %v3450_v40  ;;  %v2937_v17 = vld [vmem:[#allocation5 + $0x60] sm:$0xff]   ;;  %2754 = vmatpush3.bf16.msra.mxu0 %v2930_v3  ;;  %v2945_v3 = vld [vmem:[#allocation5 + $0x48] sm:$0xff]  }
 0x169   :  { %v918_v27 = vpop.f32.mrf.mxu0  ;;  %v1001_v39 = vpop.f32.mrf.mxu1  ;;  %v2938_v34 = vld [vmem:[#allocation5 + $0x20] sm:$0xff]   ;;  %2729 = vmatprep.subr.bf16.mxu1 %v2937_v17  ;;  %v2935_v17 = vld [vmem:[#allocation5 + $0xd0] sm:$0xff]  }
 0x16a   :  { %v3764_v54 = vadd.f32 %v918_v27, %v587_v57  ;;  %v3767_v24 = vadd.f32 %v1001_v39, %v3584_v30  ;;  %v595_v30 = vadd.f32 %v3684_v35, %v3454_v61  ;;  %2730 = vmatpush3.bf16.msra.mxu1 %v2938_v34  ;;  %v2939_v61 = vld [vmem:[#allocation5 + $0x58] sm:$0xff]   ;;  %v2944_v34 = vld [vmem:[#allocation5 + $0x10] sm:$0xff]   ;;  %2755 = vmatprep.subr.bf16.mxu0 %v2935_v17  ;;  %v2949_v17 = vld [vmem:[#allocation5 + $0x40] sm:$0xff]  }
 0x16b   :  { %v920_v18 = vpop.f32.mrf.mxu0  ;;  %v2822_v53 = vpop.f32.mrf.mxu1  ;;  %2731 = vmatprep.subr.bf16.mxu1 %v2939_v61 }
 0x16c   :  { %v3771_v55 = vadd.f32 %v920_v18, %v589_v41  ;;  %v3774_v9 = vadd.f32 %v2822_v53, %v3589_v33  ;;  %v597_v33 = vadd.f32 %v3689_v29, %v3465_v59  ;;  %v599_v41 = vadd.f32 %v3694_v10, %v3469_v2 }
 0x16d   :  { %v922_v50 = vpop.f32.mrf.mxu0  ;;  %v1004_v48 = vpop.f32.mrf.mxu1 }
 0x16e   :  { %v3778_v62 = vadd.f32 %v922_v50, %v591_v26  ;;  %v3781_v57 = vadd.f32 %v1004_v48, %v3593_v23  ;;  %v2940_v23 = vld [vmem:[#allocation5 + $0x18] sm:$0xff]   ;;  %v2943_v50 = vld [vmem:[#allocation5 + $0x50] sm:$0xff]  }
 0x16f   :  { %v926_v40 = vpop.f32.mrf.mxu0  ;;  %v2825_v28 = vpop.f32.mrf.mxu1  ;;  %2732 = vmatpush3.bf16.msra.mxu1 %v2940_v23  ;;  %v2936_v48 = vld [vmem:[#allocation5 + $0x90] sm:$0xff]  }
 0x170   :  { %v3785_v27 = vadd.f32 %v926_v40, %v595_v30  ;;  %v3788_v39 = vadd.f32 %v2825_v28, %v3598_v7  ;;  %v601_v7 = vadd.f32 %v3699_v56, %v3475_v4  ;;  %2733 = vmatprep.subr.bf16.mxu1 %v2943_v50  ;;  %2756 = vmatpush3.bf16.msra.mxu0 %v2936_v48  ;;  %v2941_v28 = vld [vmem:[#allocation5 + $0xc8] sm:$0xff]  }
 0x171   :  { %v928_v35 = vpop.f32.mrf.mxu0  ;;  %v1017_v49 = vpop.f32.mrf.mxu1  ;;  %2757 = vmatprep.subr.bf16.mxu0 %v2941_v28 }
 0x172   :  { %v3792_v18 = vadd.f32 %v928_v35, %v597_v33  ;;  %v3795_v53 = vadd.f32 %v1017_v49, %v3603_v16  ;;  %v2942_v35 = vld [vmem:[#allocation5 + $0x88] sm:$0xff]  }
 0x173   :  { %v930_v59 = vpop.f32.mrf.mxu0  ;;  %v2826_v29 = vpop.f32.mrf.mxu1  ;;  %2734 = vmatpush3.bf16.msra.mxu1 %v2944_v34  ;;  %v2946_v49 = vld [vmem:[#allocation5 + $0x8] sm:$0xff]  }
 0x174   :  { %v3799_v26 = vadd.f32 %v930_v59, %v599_v41  ;;  %v3802_v32 = vadd.f32 %v2826_v29, %v3608_v51  ;;  %2735 = vmatprep.subr.bf16.mxu1 %v2945_v3  ;;  %2758 = vmatpush3.bf16.msra.mxu0 %v2942_v35  ;;  %v2947_v29 = vld [vmem:[#allocation5 + $0xc0] sm:$0xff]  }
 0x175   :  { %v932_v2 = vpop.f32.mrf.mxu0  ;;  %v1020_v10 = vpop.f32.mrf.mxu1  ;;  %2759 = vmatprep.subr.bf16.mxu0 %v2947_v29 }
 0x176   :  { %v3804_v16 = vadd.f32 %v932_v2, %v601_v7  ;;  %v3807_v30 = vadd.f32 %v1020_v10, %v3613_v52  ;;  %v2948_v7 = vld [vmem:[#allocation5 + $0x80] sm:$0xff]  }
 0x177   :  { %v1236_v40 = vpop.f32.mrf.mxu1  ;;  %v2833_v4 = vpop.f32.mrf.mxu0  ;;  %2736 = vmatpush3.bf16.msra.mxu1 %v2946_v49  ;;  %v2950_v2 = vld [vmem:[#allocation5] sm:$0xff]  }
 0x178   :  { %v3810_v51 = vadd.f32 %v1236_v40, %v3619_v58  ;;  %v3813_v56 = vadd.f32 %v2833_v4, %v3708_v38  ;;  %2737 = vmatprep.subr.bf16.mxu1 %v2949_v17  ;;  %2760 = vmatpush3.bf16.msra.mxu0 %v2948_v7 }
 0x179   :  { %v1238_v33 = vpop.f32.mrf.mxu1  ;;  %v1349_v61 = vpop.f32.mrf.mxu0 }
 0x17a   :  { %v3816_v52 = vadd.f32 %v1238_v33, %v3625_v6  ;;  %v3819_v23 = vadd.f32 %v1349_v61, %v3714_v31 }
 0x17b   :  { %v1240_v41 = vpop.f32.mrf.mxu1  ;;  %v2834_v58 = vpop.f32.mrf.mxu0  ;;  %2738 = vmatpush3.bf16.msra.mxu1 %v2950_v2 }
 0x17c   :  { %v3822_v38 = vadd.f32 %v1240_v41, %v3631_v44  ;;  %v3825_v59 = vadd.f32 %v2834_v58, %v3722_v8 }
 0x17d   :  { %v1242_v6 = vpop.f32.mrf.mxu1  ;;  %v1352_v50 = vpop.f32.mrf.mxu0 }
 0x17e   :  { %v3828_v31 = vadd.f32 %v1242_v6, %v3637_v5  ;;  %v3831_v10 = vadd.f32 %v1352_v50, %v3727_v21  ;;  %v2110_v5 = vld [vmem:[%s4134_s1] sm:$0xff] }
 0x17f   :  { %v1246_v48 = vpop.f32.mrf.mxu1  ;;  %v2837_v44 = vpop.f32.mrf.mxu0  ;;  %v2169_v21 = vpack.c.bf16 %v2110_v5, %v2110_v5 }
 0x180   :  { %v3834_v8 = vadd.f32 %v1246_v48, %v3643_v36  ;;  %v3837_v34 = vadd.f32 %v2837_v44, %v3733_v37 }
 0x181   :  { %v1248_v40 = vpop.f32.mrf.mxu1  ;;  %v1365_v4 = vpop.f32.mrf.mxu0  ;;  %2505 = vmatprep.mubr.bf16.mxu0 %v2169_v21 }
 0x182   :  { %4146 = vst [vmem:[#allocation17_spill] sm:$0xff] %v3837_v34  ;;  %v3843_v28 = vadd.f32 %v1248_v40, %v3649_v45  ;;  %v3846_v3 = vadd.f32 %v1365_v4, %v3739_v47 }
 0x183   :  { %v1250_v33 = vpop.f32.mrf.mxu1  ;;  %v2838_v61 = vpop.f32.mrf.mxu0 }
 0x184   :  { %4147 = vst [vmem:[#allocation18_spill] sm:$0xff] %v3846_v3  ;;  %v3849_v36 = vadd.f32 %v1250_v33, %v3655_v1  ;;  %v3852_v37 = vadd.f32 %v2838_v61, %v3745_v11  ;;  %v4151_v11 = vld [vmem:[#allocation11_spill] sm:$0xff] }
 0x185   :  { %v1252_v35 = vpop.f32.mrf.mxu1  ;;  %v1368_v49 = vpop.f32.mrf.mxu0 }
 0x186   :  { %4148 = vst [vmem:[#allocation19_spill] sm:$0xff] %v3852_v37  ;;  %v3855_v41 = vadd.f32 %v1252_v35, %v3661_v0  ;;  %v3858_v45 = vadd.f32 %v1368_v49, %v3753_v43  ;;  %v4153_v43 = vld [vmem:[#allocation12_spill] sm:$0xff] }
 0x187   :  { %v1256_v58 = vpop.f32.mrf.mxu1  ;;  %v2841_v47 = vpop.f32.mrf.mxu0 }
 0x188   :  { %4149 = vst [vmem:[#allocation20_spill] sm:$0xff] %v3858_v45  ;;  %v3861_v29 = vadd.f32 %v1256_v58, %v3666_v42  ;;  %v3864_v7 = vadd.f32 %v2841_v47, %v3760_v25  ;;  %v4155_v25 = vld [vmem:[#allocation13_spill] sm:$0xff] }
 0x189   :  { %v1258_v1 = vpop.f32.mrf.mxu1  ;;  %v1381_v17 = vpop.f32.mrf.mxu0 }
 0x18a   :  { %4150 = vst [vmem:[#allocation21_spill] sm:$0xff] %v3864_v7  ;;  %v3867_v6 = vadd.f32 %v1258_v1, %v4151_v11  ;;  %v3870_v50 = vadd.f32 %v1381_v17, %v3767_v24  ;;  %v4157_v24 = vld [vmem:[#allocation14_spill] sm:$0xff] }
 0x18b   :  { %v1260_v0 = vpop.f32.mrf.mxu1  ;;  %v2842_v2 = vpop.f32.mrf.mxu0 }
 0x18c   :  { %4152 = vst [vmem:[#allocation11_spill] sm:$0xff] %v3870_v50  ;;  %v3873_v48 = vadd.f32 %v1260_v0, %v4153_v43  ;;  %v3876_v44 = vadd.f32 %v2842_v2, %v3774_v9 }
 0x18d   :  { %v1262_v42 = vpop.f32.mrf.mxu1  ;;  %v1384_v5 = vpop.f32.mrf.mxu0 }
 0x18e   :  { %4154 = vst [vmem:[#allocation12_spill] sm:$0xff] %v3876_v44  ;;  %v3879_v40 = vadd.f32 %v1262_v42, %v4155_v25  ;;  %v3882_v4 = vadd.f32 %v1384_v5, %v3781_v57 }
 0x18f   :  { %v1266_v21 = vpop.f32.mrf.mxu1  ;;  %v2845_v33 = vpop.f32.mrf.mxu0 }
 0x190   :  { %4156 = vst [vmem:[#allocation13_spill] sm:$0xff] %v3882_v4  ;;  %v3885_v61 = vadd.f32 %v1266_v21, %v4157_v24  ;;  %v3888_v35 = vadd.f32 %v2845_v33, %v3788_v39  ;;  %v3900_v39 = vld [vmem:[%s4136_s3] sm:$0xff] }
 0x191   :  { %v1268_v49 = vpop.f32.mrf.mxu1  ;;  %v1397_v58 = vpop.f32.mrf.mxu0 }
 0x192   :  { %4158 = vst [vmem:[#allocation14_spill] sm:$0xff] %v3888_v35  ;;  %v3891_v9 = vadd.f32 %v1397_v58, %v3795_v53  ;;  %v3926_v3 = vadd.f32 %v1268_v49, %v3692_v22 }
 0x193   :  { %v1270_v47 = vpop.f32.mrf.mxu1  ;;  %v2846_v1 = vpop.f32.mrf.mxu0 }
 0x194   :  { %4159 = vst [vmem:[#allocation22_spill] sm:$0xff] %v3891_v9  ;;  %v3894_v17 = vadd.f32 %v2846_v1, %v3802_v32  ;;  %v3906_v32 = vld [vmem:[%s4136_s3 + $0x8] sm:$0xff] }
 0x195   :  { %v1272_v57 = vpop.f32.mrf.mxu1  ;;  %v1400_v11 = vpop.f32.mrf.mxu0 }
 0x196   :  { %4160 = vst [vmem:[#allocation23_spill] sm:$0xff] %v3894_v17 }
 0x197   :  { %v1276_v0 = vpop.f32.mrf.mxu1  ;;  %v1616_v2 = vpop.f32.mrf.mxu0 }
 0x198   :  { %v1792_v43 = vadd.f32 %v1616_v2, %v3810_v51  ;;  %v3911_v51 = vld [vmem:[%s4136_s3 + $0x18] sm:$0xff] }
 0x199   :  { %v1278_v42 = vpop.f32.mrf.mxu1  ;;  %v1618_v5 = vpop.f32.mrf.mxu0 }
 0x19a   :  { %v1793_v53 = vadd.f32 %v1618_v5, %v3816_v52  ;;  %v1846_v33 = vadd.f32 %v3900_v39, %v1792_v43  ;;  %v3918_v52 = vld [vmem:[%s4136_s3 + $0x20] sm:$0xff]  ;;  %v3942_v22 = vadd.f32 %v1278_v42, %v3711_v20 }
 0x19b   :  { %v1280_v25 = vpop.f32.mrf.mxu1  ;;  %v1620_v21 = vpop.f32.mrf.mxu0 }
 0x19c   :  { %v1795_v24 = vadd.f32 %v1620_v21, %v3822_v38  ;;  %v1847_v2 = vadd.f32 %v3906_v32, %v1793_v53  ;;  %v1894_v4 = vmax.f32 %v1846_v33, 0.0  ;;  %v4161_v53 = vld [vmem:[#allocation15_spill] sm:$0xff] }
 0x19d   :  { %v1282_v58 = vpop.f32.mrf.mxu1  ;;  %v1622_v1 = vpop.f32.mrf.mxu0 }
 0x19e   :  { %v1849_v5 = vadd.f32 %v3911_v51, %v1795_v24  ;;  %v1796_v17 = vadd.f32 %v1622_v1, %v3828_v31  ;;  %v1895_v7 = vmax.f32 %v1847_v2, 0.0  ;;  %v3929_v24 = vadd.f32 %v1270_v47, %v4161_v53 }
 0x19f   :  { %v1286_v9 = vpop.f32.mrf.mxu1  ;;  %v1626_v35 = vpop.f32.mrf.mxu0 }
 0x1a0   :  { %v1897_v44 = vmax.f32 %v1849_v5, 0.0  ;;  %v1850_v43 = vadd.f32 %v3918_v52, %v1796_v17  ;;  %v1798_v38 = vadd.f32 %v1626_v35, %v3834_v8  ;;  %v4162_v5 = vld [vmem:[#allocation16_spill] sm:$0xff]  ;;  %v3936_v8 = vadd.f32 %v1400_v11, %v3807_v30 }
 0x1a1   :  { %v1288_v21 = vpop.f32.mrf.mxu1  ;;  %v1628_v50 = vpop.f32.mrf.mxu0  ;;  %v3933_v34 = vadd.f32 %v1272_v57, %v4162_v5  ;;  %v3955_v20 = vadd.f32 %v1286_v9, %v3730_v15 }
 0x1a2   :  { %v1942_v45 = vmax.f32 %v1894_v4, %v1897_v44  ;;  %v1898_v37 = vmax.f32 %v1850_v43, 0.0  ;;  %v1799_v31 = vadd.f32 %v1628_v50, %v3843_v28  ;;  %v3939_v44 = vadd.f32 %v1276_v0, %v3705_v46 }
 0x1a3   :  { %v1290_v1 = vpop.f32.mrf.mxu1  ;;  %v1630_v33 = vpop.f32.mrf.mxu0  ;;  %v1852_v4 = vadd.f32 %v3900_v39, %v1798_v38  ;;  %v3952_v46 = vadd.f32 %v1282_v58, %v3725_v14  ;;  %v3959_v42 = vadd.f32 %v1288_v21, %v3736_v60 }
 0x1a4   :  { %v1943_v35 = vrot.slane %v1942_v45, 4  ;;  %v1949_v17 = vmax.f32 %v1895_v7, %v1898_v37  ;;  %v1801_v28 = vadd.f32 %v1630_v33, %v3849_v36  ;;  %v1853_v2 = vadd.f32 %v3906_v32, %v1799_v31 }
 0x1a5   :  { %v1292_v50 = vpop.f32.mrf.mxu1  ;;  %v1632_v49 = vpop.f32.mrf.mxu0  ;;  %v3949_v37 = vadd.f32 %v1280_v25, %v3719_v13  ;;  %v1900_v43 = vmax.f32 %v1852_v4, 0.0  ;;  %v3963_v13 = vadd.f32 %v1290_v1, %v3742_v19 }
 0x1a6   :  { %v1944_v47 = vmax.f32 %v1942_v45, %v1943_v35  ;;  %v1950_v57 = vrot.slane %v1949_v17, 4  ;;  %v1802_v30 = vadd.f32 %v1632_v49, %v3855_v41  ;;  %v1855_v7 = vadd.f32 %v3911_v51, %v1801_v28 }
 0x1a7   :  { %v1296_v36 = vpop.f32.mrf.mxu1  ;;  %v1636_v11 = vpop.f32.mrf.mxu0  ;;  %v1901_v53 = vmax.f32 %v1853_v2, 0.0  ;;  %v3967_v5 = vadd.f32 %v1292_v50, %v3750_v63 }
 0x1a8   :  { %v1945_v0 = vrot.slane %v1944_v47, 2  ;;  %v1951_v45 = vmax.f32 %v1949_v17, %v1950_v57  ;;  %v1856_v41 = vadd.f32 %v3918_v52, %v1802_v30  ;;  %v1903_v14 = vmax.f32 %v1855_v7, 0.0 }
 0x1a9   :  { %v1804_v25 = vadd.f32 %v1636_v11, %v3861_v29  ;;  %v1298_v15 = vpop.f32.mrf.mxu1  ;;  %v1638_v9 = vpop.f32.mrf.mxu0  ;;  %v3972_v29 = vadd.f32 %v1296_v36, %v3757_v12 }
 0x1aa   :  { %v1946_v58 = vmax.f32 %v1944_v47, %v1945_v0  ;;  %v1952_v38 = vrot.slane %v1951_v45, 2  ;;  %v1904_v31 = vmax.f32 %v1856_v41, 0.0  ;;  %v1963_v33 = vmax.f32 %v1900_v43, %v1903_v14 }
 0x1ab   :  { %v1858_v60 = vadd.f32 %v3900_v39, %v1804_v25  ;;  %v1805_v21 = vadd.f32 %v1638_v9, %v3867_v6  ;;  %v1300_v35 = vpop.f32.mrf.mxu1  ;;  %v1640_v19 = vpop.f32.mrf.mxu0  ;;  %v3975_v49 = vadd.f32 %v1298_v15, %v3764_v54 }
 0x1ac   :  { %v1947_v1 = vrot.slane %v1946_v58, 1  ;;  %v1953_v17 = vmax.f32 %v1951_v45, %v1952_v38  ;;  %v1970_v4 = vmax.f32 %v1901_v53, %v1904_v31  ;;  %v1964_v28 = vrot.slane %v1963_v33, 4 }
 0x1ad   :  { %v1859_v47 = vadd.f32 %v3906_v32, %v1805_v21  ;;  %v1807_v63 = vadd.f32 %v1640_v19, %v3873_v48  ;;  %v1302_v50 = vpop.f32.mrf.mxu1  ;;  %v1642_v57 = vpop.f32.mrf.mxu0  ;;  %v1906_v30 = vmax.f32 %v1858_v60, 0.0  ;;  %v3980_v7 = vadd.f32 %v1300_v35, %v3771_v55 }
 0x1ae   :  { %v1954_v2 = vrot.slane %v1953_v17, 1  ;;  %v1971_v6 = vrot.slane %v1970_v4, 4  ;;  %v1948_v11 = vmax.f32 %v1946_v58, %v1947_v1  ;;  %v1965_v12 = vmax.f32 %v1963_v33, %v1964_v28 }
 0x1af   :  { %v1861_v36 = vadd.f32 %v3911_v51, %v1807_v63  ;;  %v1808_v54 = vadd.f32 %v1642_v57, %v3879_v40  ;;  %v1306_v0 = vpop.f32.mrf.mxu1  ;;  %v1646_v45 = vpop.f32.mrf.mxu0  ;;  %v1907_v43 = vmax.f32 %v1859_v47, 0.0  ;;  %v3985_v48 = vadd.f32 %v1302_v50, %v3778_v62 }
 0x1b0   :  { %v1972_v41 = vmax.f32 %v1970_v4, %v1971_v6  ;;  %v1810_v14 = vadd.f32 %v1646_v45, %v3885_v61  ;;  %v1955_v25 = vmax.f32 %v1953_v17, %v1954_v2  ;;  %v1966_v15 = vrot.slane %v1965_v12, 2 }
 0x1b1   :  { %v1909_v9 = vmax.f32 %v1861_v36, 0.0  ;;  %v1862_v55 = vadd.f32 %v3918_v52, %v1808_v54  ;;  %v1308_v58 = vpop.f32.mrf.mxu1  ;;  %v1648_v38 = vpop.f32.mrf.mxu0  ;;  %v3990_v31 = vadd.f32 %v1306_v0, %v3785_v27 }
 0x1b2   :  { %v1973_v53 = vrot.slane %v1972_v41, 2  ;;  %v1864_v40 = vadd.f32 %v3900_v39, %v1810_v14  ;;  %v1811_v33 = vadd.f32 %v1648_v38, %v3926_v3  ;;  %v1967_v60 = vmax.f32 %v1965_v12, %v1966_v15 }
 0x1b3   :  { %v1984_v62 = vmax.f32 %v1906_v30, %v1909_v9  ;;  %v1910_v21 = vmax.f32 %v1862_v55, 0.0  ;;  %v3995_v61 = vadd.f32 %v1308_v58, %v3792_v18  ;;  %v1310_v35 = vpop.f32.mrf.mxu1  ;;  %v1650_v19 = vpop.f32.mrf.mxu0 }
 0x1b4   :  { %v1974_v1 = vmax.f32 %v1972_v41, %v1973_v53  ;;  %v1912_v17 = vmax.f32 %v1864_v40, 0.0  ;;  %v1865_v4 = vadd.f32 %v3906_v32, %v1811_v33  ;;  %v3999_v28 = vadd.f32 %v1310_v35, %v3799_v26 }
 0x1b5   :  { %v1968_v27 = vrot.slane %v1967_v60, 1  ;;  %v1985_v47 = vrot.slane %v1984_v62, 4  ;;  %v1991_v63 = vmax.f32 %v1907_v43, %v1910_v21  ;;  %v1813_v3 = vadd.f32 %v1650_v19, %v3929_v24  ;;  %v1312_v50 = vpop.f32.mrf.mxu1  ;;  %v1652_v57 = vpop.f32.mrf.mxu0  ;;  %v4010_v24 = vld [vmem:[%s4136_s3 + $0x10] sm:$0xff] }
 0x1b6   :  { %v1975_v2 = vrot.slane %v1974_v1, 1  ;;  %v1913_v18 = vmax.f32 %v1865_v4, 0.0  ;;  %v4003_v6 = vadd.f32 %v1312_v50, %v3804_v16  ;;  %v1814_v30 = vadd.f32 %v1652_v57, %v3933_v34  ;;  %v4027_v50 = vld [vmem:[%s4136_s3 + $0x28] sm:$0xff] }
 0x1b7   :  { %v1969_v12 = vmax.f32 %v1967_v60, %v1968_v27  ;;  %v1986_v36 = vmax.f32 %v1984_v62, %v1985_v47  ;;  %v1992_v54 = vrot.slane %v1991_v63, 4  ;;  %v1867_v26 = vadd.f32 %v3911_v51, %v1813_v3  ;;  %v1656_v0 = vpop.f32.mrf.mxu0  ;;  %v2853_v45 = vpop.f32.mrf.mxu1 }
 0x1b8   :  { %v1976_v41 = vmax.f32 %v1974_v1, %v1975_v2  ;;  %v1868_v43 = vadd.f32 %v3918_v52, %v1814_v30  ;;  %v1816_v16 = vadd.f32 %v1656_v0, %v3939_v44  ;;  %v1800_v14 = vadd.f32 %v2853_v45, %v3813_v56 }
 0x1b9   :  { %v2136_v34 = vsel %vm2135_vm5, %v1969_v12, %v1948_v11  ;;  %v1987_v15 = vrot.slane %v1986_v36, 2  ;;  %v1993_v9 = vmax.f32 %v1991_v63, %v1992_v54  ;;  %v1915_v55 = vmax.f32 %v1867_v26, 0.0  ;;  %v1658_v58 = vpop.f32.mrf.mxu0  ;;  %v1729_v38 = vpop.f32.mrf.mxu1 }
 0x1ba   :  { %v4017_v53 = vsel %vm2135_vm5, %v1976_v41, %v1955_v25  ;;  %v1916_v40 = vmax.f32 %v1868_v43, 0.0  ;;  %v1870_v33 = vadd.f32 %v3900_v39, %v1816_v16  ;;  %v1854_v60 = vadd.f32 %v4010_v24, %v1800_v14 }
 0x1bb   :  { %v1988_v62 = vmax.f32 %v1986_v36, %v1987_v15  ;;  %v1994_v21 = vrot.slane %v1993_v9, 2  ;;  %v2005_v44 = vmax.f32 %v1912_v17, %v1915_v55  ;;  %v1817_v56 = vadd.f32 %v1658_v58, %v3942_v22  ;;  %v1660_v35 = vpop.f32.mrf.mxu0  ;;  %v2854_v11 = vpop.f32.mrf.mxu1 }
 0x1bc   :  { %v2012_v19 = vmax.f32 %v1913_v18, %v1916_v40  ;;  %v1918_v1 = vmax.f32 %v1870_v33, 0.0  ;;  %v1902_v4 = vmax.f32 %v1854_v60, 0.0  ;;  %v1794_v27 = vadd.f32 %v1729_v38, %v3819_v23 }
 0x1bd   :  { %v1989_v47 = vrot.slane %v1988_v62, 1  ;;  %v1995_v25 = vmax.f32 %v1993_v9, %v1994_v21  ;;  %v2006_v63 = vrot.slane %v2005_v44, 4  ;;  %v1871_v3 = vadd.f32 %v3906_v32, %v1817_v56  ;;  %v1662_v17 = vpop.f32.mrf.mxu0  ;;  %v1732_v57 = vpop.f32.mrf.mxu1 }
 0x1be   :  { %v2013_v22 = vrot.slane %v2012_v19, 4  ;;  %v1848_v2 = vadd.f32 %v4010_v24, %v1794_v27  ;;  %v1819_v18 = vadd.f32 %v1660_v35, %v3949_v37  ;;  %v1803_v23 = vadd.f32 %v2854_v11, %v3825_v59 }
 0x1bf   :  { %v1990_v30 = vmax.f32 %v1988_v62, %v1989_v47  ;;  %v1996_v12 = vrot.slane %v1995_v25, 1  ;;  %v2007_v36 = vmax.f32 %v2005_v44, %v2006_v63  ;;  %v1919_v54 = vmax.f32 %v1871_v3, 0.0  ;;  %v1666_v26 = vpop.f32.mrf.mxu0  ;;  %v2857_v0 = vpop.f32.mrf.mxu1  ;;  %v4163_v44 = vld [vmem:[#allocation17_spill] sm:$0xff] }
 0x1c0   :  { %v2014_v45 = vmax.f32 %v2012_v19, %v2013_v22  ;;  %v1896_v41 = vmax.f32 %v1848_v2, 0.0  ;;  %v1873_v43 = vadd.f32 %v3911_v51, %v1819_v18  ;;  %v1857_v16 = vadd.f32 %v4027_v50, %v1803_v23 }
 0x1c1   :  { %v2138_v14 = vsel %vm2137_vm6, %v1990_v30, %v2136_v34  ;;  %v4035_v15 = vmax.f32 %v1995_v25, %v1996_v12  ;;  %v2008_v9 = vrot.slane %v2007_v36, 2  ;;  %v1820_v37 = vadd.f32 %v1662_v17, %v3952_v46  ;;  %v1668_v59 = vpop.f32.mrf.mxu0  ;;  %v1745_v55 = vpop.f32.mrf.mxu1 }
 0x1c2   :  { %v2015_v58 = vrot.slane %v2014_v45, 2  ;;  %v1921_v38 = vmax.f32 %v1873_v43, 0.0  ;;  %v1905_v40 = vmax.f32 %v1857_v16, 0.0  ;;  %v1797_v33 = vadd.f32 %v1732_v57, %v3831_v10  ;;  %v4164_v16 = vld [vmem:[#allocation18_spill] sm:$0xff] }
 0x1c3   :  { %v2009_v60 = vmax.f32 %v2007_v36, %v2008_v9  ;;  %v1874_v62 = vadd.f32 %v3918_v52, %v1820_v37  ;;  %v1822_v21 = vadd.f32 %v1666_v26, %v3955_v20  ;;  %v1812_v56 = vadd.f32 %v2857_v0, %v4163_v44  ;;  %v1670_v34 = vpop.f32.mrf.mxu0  ;;  %v2858_v35 = vpop.f32.mrf.mxu1 }
 0x1c4   :  { %v2016_v11 = vmax.f32 %v2014_v45, %v2015_v58  ;;  %v2026_v19 = vmax.f32 %v1918_v1, %v1921_v38  ;;  %v1977_v27 = vmax.f32 %v1902_v4, %v1905_v40  ;;  %v1851_v46 = vadd.f32 %v4027_v50, %v1797_v33 }
 0x1c5   :  { %v2010_v47 = vrot.slane %v2009_v60, 1  ;;  %v1922_v25 = vmax.f32 %v1874_v62, 0.0  ;;  %v1876_v63 = vadd.f32 %v3900_v39, %v1822_v21  ;;  %v1866_v10 = vadd.f32 %v4010_v24, %v1812_v56  ;;  %v1672_v20 = vpop.f32.mrf.mxu0  ;;  %v1748_v2 = vpop.f32.mrf.mxu1  ;;  %v4165_v21 = vld [vmem:[#allocation19_spill] sm:$0xff] }
 0x1c6   :  { %v2017_v3 = vrot.slane %v2016_v11, 1  ;;  %v2027_v17 = vrot.slane %v2026_v19, 4  ;;  %v1978_v57 = vrot.slane %v1977_v27, 4  ;;  %v1899_v22 = vmax.f32 %v1851_v46, 0.0 }
 0x1c7   :  { %v2011_v18 = vmax.f32 %v2009_v60, %v2010_v47  ;;  %v2033_v23 = vmax.f32 %v1919_v54, %v1922_v25  ;;  %v1924_v30 = vmax.f32 %v1876_v63, 0.0  ;;  %v1914_v12 = vmax.f32 %v1866_v10, 0.0  ;;  %v1676_v40 = vpop.f32.mrf.mxu0  ;;  %v2861_v33 = vpop.f32.mrf.mxu1 }
 0x1c8   :  { %v4045_v1 = vmax.f32 %v2016_v11, %v2017_v3  ;;  %v2028_v4 = vmax.f32 %v2026_v19, %v2027_v17  ;;  %v1979_v36 = vmax.f32 %v1977_v27, %v1978_v57  ;;  %v1956_v26 = vmax.f32 %v1896_v41, %v1899_v22  ;;  %v4166_v17 = vld [vmem:[#allocation20_spill] sm:$0xff] }
 0x1c9   :  { %v4048_v0 = vsel %vm2139_vm7, %v2011_v18, %v2138_v14  ;;  %v2034_v45 = vrot.slane %v2033_v23, 4  ;;  %v1823_v43 = vadd.f32 %v1668_v59, %v3959_v42  ;;  %v1806_v9 = vadd.f32 %v1745_v55, %v4164_v16  ;;  %v1678_v25 = vpop.f32.mrf.mxu0  ;;  %v1761_v63 = vpop.f32.mrf.mxu1 }
 0x1ca   :  { %v2029_v37 = vrot.slane %v2028_v4, 2  ;;  %v1980_v58 = vrot.slane %v1979_v36, 2  ;;  %v1957_v38 = vrot.slane %v1956_v26, 4  ;;  %v1825_v54 = vadd.f32 %v1670_v34, %v3963_v13 }
 0x1cb   :  { %v2035_v60 = vmax.f32 %v2033_v23, %v2034_v45  ;;  %v1877_v62 = vadd.f32 %v3906_v32, %v1823_v43  ;;  %v1860_v41 = vadd.f32 %v4010_v24, %v1806_v9  ;;  %v1815_v14 = vadd.f32 %v2858_v35, %v4165_v21 }
 0x1cc   :  { %v2030_v44 = vmax.f32 %v2028_v4, %v2029_v37  ;;  %v1981_v56 = vmax.f32 %v1979_v36, %v1980_v58  ;;  %v1958_v11 = vmax.f32 %v1956_v26, %v1957_v38  ;;  %v1879_v42 = vadd.f32 %v3911_v51, %v1825_v54  ;;  %v4167_v58 = vld [vmem:[#allocation21_spill] sm:$0xff] }
 0x1cd   :  { %v2036_v59 = vrot.slane %v2035_v60, 2  ;;  %v1925_v55 = vmax.f32 %v1877_v62, 0.0  ;;  %v1908_v19 = vmax.f32 %v1860_v41, 0.0  ;;  %v1869_v27 = vadd.f32 %v4027_v50, %v1815_v14 }
 0x1ce   :  { %v2031_v13 = vrot.slane %v2030_v44, 1  ;;  %v1982_v34 = vrot.slane %v1981_v56, 1  ;;  %v1959_v46 = vrot.slane %v1958_v11, 2  ;;  %v1927_v47 = vmax.f32 %v1879_v42, 0.0 }
 0x1cf   :  { %v2037_v10 = vmax.f32 %v2035_v60, %v2036_v59  ;;  %v1917_v3 = vmax.f32 %v1869_v27, 0.0  ;;  %v1826_v35 = vadd.f32 %v1672_v20, %v3967_v5  ;;  %v1809_v57 = vadd.f32 %v1748_v2, %v4166_v17  ;;  %v1680_v5 = vpop.f32.mrf.mxu0  ;;  %v2862_v20 = vpop.f32.mrf.mxu1 }
 0x1d0   :  { %v4060_v22 = vmax.f32 %v2030_v44, %v2031_v13  ;;  %v1983_v18 = vmax.f32 %v1981_v56, %v1982_v34  ;;  %v1960_v23 = vmax.f32 %v1958_v11, %v1959_v46  ;;  %v2047_v4 = vmax.f32 %v1924_v30, %v1927_v47 }
 0x1d1   :  { %v2038_v36 = vrot.slane %v2037_v10, 1  ;;  %v2019_v26 = vmax.f32 %v1914_v12, %v1917_v3  ;;  %v1880_v45 = vadd.f32 %v3918_v52, %v1826_v35  ;;  %v1863_v43 = vadd.f32 %v4027_v50, %v1809_v57  ;;  %v1682_v59 = vpop.f32.mrf.mxu0  ;;  %v1764_v27 = vpop.f32.mrf.mxu1  ;;  %v4168_v3 = vld [vmem:[#allocation11_spill] sm:$0xff] }
 0x1d2   :  { %v1961_v16 = vrot.slane %v1960_v23, 1  ;;  %v2048_v9 = vrot.slane %v2047_v4, 4  ;;  %v1828_v37 = vadd.f32 %v1676_v40, %v3972_v29  ;;  %v1824_v38 = vadd.f32 %v2861_v33, %v4167_v58 }
 0x1d3   :  { %v4066_v2 = vmax.f32 %v2037_v10, %v2038_v36  ;;  %v2020_v54 = vrot.slane %v2019_v26, 4  ;;  %v1928_v60 = vmax.f32 %v1880_v45, 0.0  ;;  %v1911_v62 = vmax.f32 %v1863_v43, 0.0  ;;  %v1686_v45 = vpop.f32.mrf.mxu0  ;;  %v2865_v43 = vpop.f32.mrf.mxu1 }
 0x1d4   :  { %v1962_v30 = vmax.f32 %v1960_v23, %v1961_v16  ;;  %v2049_v41 = vmax.f32 %v2047_v4, %v2048_v9  ;;  %v1882_v12 = vadd.f32 %v3900_v39, %v1828_v37  ;;  %v1878_v21 = vadd.f32 %v4010_v24, %v1824_v38 }
 0x1d5   :  { %v2021_v14 = vmax.f32 %v2019_v26, %v2020_v54  ;;  %v2054_v44 = vmax.f32 %v1925_v55, %v1928_v60  ;;  %v1998_v56 = vmax.f32 %v1908_v19, %v1911_v62  ;;  %v1829_v29 = vadd.f32 %v1678_v25, %v3975_v49  ;;  %v4169_v19 = vld [vmem:[#allocation12_spill] sm:$0xff] }
 0x1d6   :  { %v2156_v40 = vsel %vm2135_vm5, %v1983_v18, %v1962_v30  ;;  %v2050_v33 = vrot.slane %v2049_v41, 2  ;;  %v1930_v11 = vmax.f32 %v1882_v12, 0.0  ;;  %v1926_v42 = vmax.f32 %v1878_v21, 0.0  ;;  %v4170_v12 = vld [vmem:[#allocation13_spill] sm:$0xff] }
 0x1d7   :  { %v2022_v13 = vrot.slane %v2021_v14, 2  ;;  %v2055_v34 = vrot.slane %v2054_v44, 4  ;;  %v1999_v46 = vrot.slane %v1998_v56, 4  ;;  %v1883_v47 = vadd.f32 %v3906_v32, %v1829_v29 }
 0x1d8   :  { %v2051_v10 = vmax.f32 %v2049_v41, %v2050_v33  ;;  %v1818_v35 = vadd.f32 %v1761_v63, %v4168_v3  ;;  %v1831_v55 = vadd.f32 %v1680_v5, %v3980_v7  ;;  %v1827_v17 = vadd.f32 %v2862_v20, %v4169_v19 }
 0x1d9   :  { %v2023_v49 = vmax.f32 %v2021_v14, %v2022_v13  ;;  %v2056_v25 = vmax.f32 %v2054_v44, %v2055_v34  ;;  %v2000_v57 = vmax.f32 %v1998_v56, %v1999_v46  ;;  %v1931_v18 = vmax.f32 %v1883_v47, 0.0  ;;  %v1688_v44 = vpop.f32.mrf.mxu0  ;;  %v1777_v56 = vpop.f32.mrf.mxu1 }
 0x1da   :  { %v2052_v23 = vrot.slane %v2051_v10, 1  ;;  %v1872_v4 = vadd.f32 %v4010_v24, %v1818_v35  ;;  %v1885_v36 = vadd.f32 %v3911_v51, %v1831_v55  ;;  %v1881_v26 = vadd.f32 %v4027_v50, %v1827_v17 }
 0x1db   :  { %v2024_v16 = vrot.slane %v2023_v49, 1  ;;  %v2057_v9 = vrot.slane %v2056_v25, 2  ;;  %v2001_v63 = vrot.slane %v2000_v57, 2  ;;  %v1832_v7 = vadd.f32 %v1682_v59, %v3985_v48  ;;  %v4171_v59 = vld [vmem:[#allocation14_spill] sm:$0xff]  ;;  %v1690_v17 = vpop.f32.mrf.mxu0 }
 0x1dc   :  { %v4080_v37 = vmax.f32 %v2051_v10, %v2052_v23  ;;  %v1920_v58 = vmax.f32 %v1872_v4, 0.0  ;;  %v1933_v38 = vmax.f32 %v1885_v36, 0.0  ;;  %v1929_v5 = vmax.f32 %v1881_v26, 0.0 }
 0x1dd   :  { %v4082_v20 = vmax.f32 %v2023_v49, %v2024_v16  ;;  %v2058_v54 = vmax.f32 %v2056_v25, %v2057_v9  ;;  %v2002_v60 = vmax.f32 %v2000_v57, %v2001_v63  ;;  %v1886_v62 = vadd.f32 %v3918_v52, %v1832_v7  ;;  %v2866_v49 = vpop.f32.mrf.mxu1  ;;  %v4173_v63 = vld [vmem:[#allocation23_spill] sm:$0xff] }
 0x1de   :  { %v2068_v30 = vmax.f32 %v1930_v11, %v1933_v38  ;;  %v2061_v41 = vmax.f32 %v1926_v42, %v1929_v5  ;;  %v1821_v21 = vadd.f32 %v1764_v27, %v4170_v12  ;;  %v1834_v14 = vadd.f32 %v1686_v45, %v3990_v31 }
 0x1df   :  { %v2059_v48 = vrot.slane %v2058_v54, 1  ;;  %v2003_v29 = vrot.slane %v2002_v60, 1  ;;  %v1934_v33 = vmax.f32 %v1886_v62, 0.0  ;;  %v1836_v13 = vadd.f32 %v2865_v43, %v4171_v59 }
 0x1e0   :  { %v2069_v34 = vrot.slane %v2068_v30, 4  ;;  %v2062_v46 = vrot.slane %v2061_v41, 4  ;;  %v1875_v47 = vadd.f32 %v4027_v50, %v1821_v21  ;;  %v1888_v10 = vadd.f32 %v3900_v39, %v1834_v14 }
 0x1e1   :  { %v4090_v3 = vmax.f32 %v2058_v54, %v2059_v48  ;;  %v2004_v11 = vmax.f32 %v2002_v60, %v2003_v29  ;;  %v2075_v42 = vmax.f32 %v1931_v18, %v1934_v33  ;;  %v1890_v27 = vadd.f32 %v4010_v24, %v1836_v13  ;;  %v4172_v18 = vld [vmem:[#allocation22_spill] sm:$0xff] }
 0x1e2   :  { %v2070_v31 = vmax.f32 %v2068_v30, %v2069_v34  ;;  %v2063_v35 = vmax.f32 %v2061_v41, %v2062_v46  ;;  %v1923_v55 = vmax.f32 %v1875_v47, 0.0  ;;  %v1936_v19 = vmax.f32 %v1888_v10, 0.0  ;;  %v1780_v41 = vpop.f32.mrf.mxu1 }
 0x1e3   :  { %v2157_v25 = vsel %vm2137_vm6, %v2004_v11, %v2156_v40  ;;  %v2076_v57 = vrot.slane %v2075_v42, 4  ;;  %v1938_v23 = vmax.f32 %v1890_v27, 0.0  ;;  %v1835_v4 = vadd.f32 %v1688_v44, %v3995_v61  ;;  %v1692_v61 = vpop.f32.mrf.mxu0 }
 0x1e4   :  { %v2071_v39 = vrot.slane %v2070_v31, 2  ;;  %v2064_v36 = vrot.slane %v2063_v35, 2  ;;  %v2040_v26 = vmax.f32 %v1920_v58, %v1923_v55  ;;  %v1830_v45 = vadd.f32 %v1777_v56, %v4172_v18 }
 0x1e5   :  { %v2077_v43 = vmax.f32 %v2075_v42, %v2076_v57  ;;  %v1889_v16 = vadd.f32 %v3906_v32, %v1835_v4  ;;  %v1837_v9 = vadd.f32 %v1690_v17, %v3999_v28  ;;  %v1839_v7 = vadd.f32 %v2866_v49, %v4173_v63 }
 0x1e6   :  { %v2072_v38 = vmax.f32 %v2070_v31, %v2071_v39  ;;  %v2065_v40 = vmax.f32 %v2063_v35, %v2064_v36  ;;  %v2041_v5 = vrot.slane %v2040_v26, 4  ;;  %v1884_v54 = vadd.f32 %v4010_v24, %v1830_v45 }
 0x1e7   :  { %v2078_v60 = vrot.slane %v2077_v43, 2  ;;  %v1937_v62 = vmax.f32 %v1889_v16, 0.0  ;;  %v1891_v58 = vadd.f32 %v3911_v51, %v1837_v9  ;;  %v1893_v30 = vadd.f32 %v4027_v50, %v1839_v7 }
 0x1e8   :  { %v2073_v12 = vrot.slane %v2072_v38, 1  ;;  %v2066_v21 = vrot.slane %v2065_v40, 1  ;;  %v2042_v32 = vmax.f32 %v2040_v26, %v2041_v5  ;;  %v1932_v14 = vmax.f32 %v1884_v54, 0.0 }
 0x1e9   :  { %v2079_v28 = vmax.f32 %v2077_v43, %v2078_v60  ;;  %v1939_v44 = vmax.f32 %v1891_v58, 0.0  ;;  %v1941_v56 = vmax.f32 %v1893_v30, 0.0  ;;  %v1838_v48 = vadd.f32 %v1692_v61, %v4003_v6 }
 0x1ea   :  { %v2074_v29 = vmax.f32 %v2072_v38, %v2073_v12  ;;  %v2067_v33 = vmax.f32 %v2065_v40, %v2066_v21  ;;  %v2043_v24 = vrot.slane %v2042_v32, 2  ;;  %v1833_v59 = vadd.f32 %v1780_v41, %v3936_v8 }
 0x1eb   :  { %v2080_v13 = vrot.slane %v2079_v28, 1  ;;  %v2089_v34 = vmax.f32 %v1936_v19, %v1939_v44  ;;  %v2103_v51 = vmax.f32 %v1938_v23, %v1941_v56  ;;  %v1892_v46 = vadd.f32 %v3918_v52, %v1838_v48  ;;  %v2640_v44 = vld [vmem:[%s4138_s5] ss:$0 sm:$0xff] }
 0x1ec   :  { %v2044_v47 = vmax.f32 %v2042_v32, %v2043_v24  ;;  %v1887_v10 = vadd.f32 %v4027_v50, %v1833_v59  ;;  %v2142_v11 = vsel %vm2141_vm8, %v4060_v22, %v4048_v0  ;;  %v2150_v6 = vsel %vm2137_vm6, %v4035_v15, %v4017_v53 }
 0x1ed   :  { %v2090_v42 = vrot.slane %v2089_v34, 4  ;;  %v2104_v27 = vrot.slane %v2103_v51, 4  ;;  %v1940_v31 = vmax.f32 %v1892_v46, 0.0  ;;  %v2081_v8 = vmax.f32 %v2079_v28, %v2080_v13 }
 0x1ee   :  { %v2045_v35 = vrot.slane %v2044_v47, 1  ;;  %v1935_v55 = vmax.f32 %v1887_v10, 0.0  ;;  %v2144_v52 = vsel %vm2143_vm9, %v4080_v37, %v2142_v11  ;;  %v2151_v50 = vsel %vm2139_vm7, %v4045_v1, %v2150_v6 }
 0x1ef   :  { %v2091_v19 = vmax.f32 %v2089_v34, %v2090_v42  ;;  %v2105_v17 = vmax.f32 %v2103_v51, %v2104_v27  ;;  %v2096_v49 = vmax.f32 %v1937_v62, %v1940_v31  ;;  %v2146_v0 = vsel %vm2145_vm10, %v2074_v29, %v2144_v52 }
 0x1f0   :  { %v2046_v22 = vmax.f32 %v2044_v47, %v2045_v35  ;;  %v2082_v57 = vmax.f32 %v1932_v14, %v1935_v55  ;;  %v2152_v53 = vsel %vm2141_vm8, %v4066_v2, %v2151_v50  ;;  %v2158_v15 = vsel %vm2139_vm7, %v4082_v20, %v2157_v25 }
 0x1f1   :  { %v2092_v23 = vrot.slane %v2091_v19, 2  ;;  %v2106_v4 = vrot.slane %v2105_v17, 2  ;;  %v2097_v39 = vrot.slane %v2096_v49, 4  ;;  %v2153_v37 = vsel %vm2143_vm9, %v4090_v3, %v2152_v53 }
 0x1f2   :  { %v2083_v1 = vrot.slane %v2082_v57, 4  ;;  %v2154_v36 = vsel %vm2145_vm10, %v2081_v8, %v2153_v37  ;;  %v2159_v26 = vsel %vm2141_vm8, %v2046_v22, %v2158_v15 }
 0x1f3   :  { %v2093_v18 = vmax.f32 %v2091_v19, %v2092_v23  ;;  %v2098_v45 = vmax.f32 %v2096_v49, %v2097_v39  ;;  %v2160_v43 = vsel %vm2143_vm9, %v2067_v33, %v2159_v26  ;;  %v2107_v9 = vmax.f32 %v2105_v17, %v2106_v4 }
 0x1f4   :  { %v2084_v16 = vmax.f32 %v2082_v57, %v2083_v1 }
 0x1f5   :  { %v2094_v2 = vrot.slane %v2093_v18, 1  ;;  %v2099_v63 = vrot.slane %v2098_v45, 2  ;;  %v2108_v40 = vrot.slane %v2107_v9, 1 }
 0x1f6   :  { %v2085_v20 = vrot.slane %v2084_v16, 2 }
 0x1f7   :  { %v2095_v25 = vmax.f32 %v2093_v18, %v2094_v2  ;;  %v2100_v7 = vmax.f32 %v2098_v45, %v2099_v63  ;;  %v2109_v62 = vmax.f32 %v2107_v9, %v2108_v40 }
 0x1f8   :  { %v2086_v38 = vmax.f32 %v2084_v16, %v2085_v20 }
 0x1f9   :  { %v2101_v3 = vrot.slane %v2100_v7, 1  ;;  %v2148_v5 = vsel %vm2147_vm11, %v2095_v25, %v2146_v0 }
 0x1fa   :  { %v2087_v54 = vrot.slane %v2086_v38, 1  ;;  %v2166_v21 = vpack.c.bf16 %v2148_v5, %v2148_v5 }
 0x1fb   :  { %v2102_v61 = vmax.f32 %v2100_v7, %v2101_v3 }
 0x1fc   :  { %v2088_v60 = vmax.f32 %v2086_v38, %v2087_v54 }
 0x1fd   :  { %v2155_v58 = vsel %vm2147_vm11, %v2102_v61, %v2154_v36 }
 0x1fe   :  { %v2161_v30 = vsel %vm2145_vm10, %v2088_v60, %v2160_v43  ;;  %v2167_v41 = vpack.c.bf16 %v2155_v58, %v2155_v58 }
 0x1ff   :  { %v2162_v12 = vsel %vm2147_vm11, %v2109_v62, %v2161_v30 }
 0x200   :  { %v2168_v32 = vpack.c.bf16 %v2162_v12, %v2162_v12  ;;  %2465 = vmatprep.mubr.bf16.mxu1 %v2167_v41 }
 0x201   :  { %2466 = vmatmul.mubr.bf16.vlgmr.msra.gmra.mxu1 %v2166_v21 }
 0x202   :  { %2506 = vmatmul.mubr.bf16.vlgmr.msra.gmra.mxu0 %v2168_v32 }
 0x2c1   :  { %v2739_v14 = vpop.f32.mrf.mxu1 }
 0x2c2   :  { %v2761_v28 = vpop.f32.mrf.mxu0 }
 0x2c3   :  { %v2740_v56 = vpop.f32.mrf.mxu1 }
 0x2c4   :  { %v2741_v48 = vadd.f32 %v2740_v56, %v2739_v14  ;;  %v2762_v29 = vpop.f32.mrf.mxu0 }
 0x2c5   :  { %v2742_v33 = vpop.f32.mrf.mxu1  ;;  %v2763_v59 = vadd.f32 %v2762_v29, %v2761_v28 }
 0x2c6   :  { %v2468_v24 = vadd.f32 %v2741_v48, %v2640_v44  ;;  %v2764_v13 = vpop.f32.mrf.mxu0 }
 0x2c7   :  { %v2743_v34 = vpop.f32.mrf.mxu1 }
 0x2c8   :  { %v2508_v51 = vadd.f32 %v2763_v59, %v2468_v24  ;;  %v2765_v46 = vpop.f32.mrf.mxu0 }
 0x2ca   :  { %2513 = vst [vmem:[#allocation7] sm:$0xff] %v2508_v51 }
 0x2cb   :  { %3002 = shalt.err (!%p2999_p0)
}
 0x2cc   :  { %2523 = dma.vmem_to_hbm [thread:$0]  %s2521_s29, 128, %s4139_s6, [#allocation4]  }
 0x2cd   :  { %3015 = dma.done.wait [#allocation4], 128  }
 0x2ce   :  { %3016 = vsyncadd [#allocation4], 4294967168 }
 0x2cf   :  { %2527 = vsyncpa [#allocation3], 1 }
 0x2d0   :  { %2528 = vsyncpa [#allocation6], 1 }
 0x2d1   :  { %2529 = vsyncpa [#allocation4], 1 }

</bundles_post_ra>
